<compile_context>
chip_gen: v5e
topology: v5e:2x2
jax: 0.10.0
libtpu: 0.0.40
codegen_flags: <defaults>
</compile_context>

<pallas_src>
import jax
import jax.numpy as jnp
from jax import lax
from jax.experimental import pallas as pl
from jax.experimental.pallas import tpu as pltpu


def _sigmoid(x):
    # sigmoid(x) == 0.5 * (1 + tanh(x/2)); tanh runs on the EUP (free slot).
    return 0.5 * (jnp.tanh(0.5 * x) + 1.0)


def gru_kernel(gx_ref, w_hh_ref, b_hn_ref, out_ref, h_scr):
    """Serial GRU recurrence over one (batch block, time chunk).

    gx_ref:   (Tc, Bt, 3*Hp)  precomputed x-side gate pre-activations (+ biases)
    w_hh_ref: (Hp, 3*Hp)      hidden->gate weights [r | z | n], zero-padded
    b_hn_ref: (1, Hp)         b_hn (stays inside the r * (.) term)
    out_ref:  (Tc, Bt, Hp)    per-step hidden states (time-major, lane-dense)
    h_scr:    (Bt, Hp)        hidden state carried across time chunks (VMEM)
    """
    Tc, Bt, Hp = out_ref.shape

    # New batch block -> reset the carried hidden state (h_0 = 0).
    @pl.when(pl.program_id(1) == 0)
    def _init():
        h_scr[...] = jnp.zeros_like(h_scr)

    # Loop-invariant loads / broadcasts, hoisted out of the unrolled loop.
    w_hh = w_hh_ref[...]
    b_hn = jnp.broadcast_to(b_hn_ref[...], (Bt, Hp))

    # Hidden state carried as a value (vregs) within the chunk.
    h = h_scr[...]

    # Bounded static unroll of the time chunk (scheduler visibility); the
    # cross-chunk dependency is carried via h_scr across the grid's time axis.
    for t in range(Tc):
        gx = gx_ref[t]                                               # (Bt, 3*Hp) dense slab
        hw = jnp.dot(h, w_hh, preferred_element_type=jnp.float32)    # (Bt, 3*Hp)
        r = _sigmoid(gx[:, 0 * Hp:1 * Hp] + hw[:, 0 * Hp:1 * Hp])
        z = _sigmoid(gx[:, 1 * Hp:2 * Hp] + hw[:, 1 * Hp:2 * Hp])
        n = jnp.tanh(gx[:, 2 * Hp:3 * Hp] + r * (hw[:, 2 * Hp:3 * Hp] + b_hn))
        h = (1.0 - z) * n + z * h
        out_ref[t] = h.astype(out_ref.dtype)                         # dense (Bt, Hp) store

    h_scr[...] = h


def _pick_batch_tile(B):
    # Prefer >= 2 grid programs (v7x: 2 TensorCores share the "parallel" axis)
    # with sublane-dense (multiple-of-8) tiles, capped to bound VMEM per block.
    for cand in (128, 64, 32, 16, 8):
        if B % cand == 0 and B // cand >= 2:
            return cand
    return B  # small B: one block; its sublane dim equals the full batch dim.


def _pick_time_chunk(T, max_unroll=16):
    # Largest divisor of T not exceeding max_unroll (bounds code size & VMEM).
    tc = 1
    for cand in range(1, min(T, max_unroll) + 1):
        if T % cand == 0:
            tc = cand
    return tc


def gru_module_forward(x_btd, w_ih, w_hh, b_ih, b_hh, *, batch_tile=None,
                       max_time_unroll=16):
    """Forward pass equivalent to GRUModule.forward (batch_first nn.GRU).

    x_btd: (B, T, D) float32
    w_ih:  (3H, D)   w_hh: (3H, H)   b_ih, b_hh: (3H,)   (PyTorch param shapes)
    returns: (B, T, H) float32
    """
    B, T, D = x_btd.shape
    H = w_ih.shape[0] // 3
    Hp = ((H + 127) // 128) * 128  # lane-dense / MXU-aligned hidden width

    f32 = jnp.float32
    x = x_btd.astype(f32)
    w_ih = w_ih.astype(f32)
    w_hh = w_hh.astype(f32)
    b_ih = b_ih.astype(f32)
    b_hh = b_hh.astype(f32)

    def gate(a, g):  # g-th gate slab along the leading 3H axis
        return a[g * H:(g + 1) * H]

    def pad_cols(m):  # (rows, H) -> (rows, Hp)
        return jnp.pad(m, ((0, 0), (0, Hp - H)))

    def pad_vec(v):  # (H,) -> (Hp,)
        return jnp.pad(v, (0, Hp - H))

    # (D, 3*Hp): per-gate transpose + zero-pad so each gate slab is 128-aligned.
    w_ih_p = jnp.concatenate([pad_cols(gate(w_ih, g).T) for g in range(3)], axis=1)
    # (Hp, 3*Hp): same, plus zero-pad the contracted (hidden) dimension.
    w_hh_p = jnp.concatenate([pad_cols(gate(w_hh, g).T) for g in range(3)], axis=1)
    w_hh_p = jnp.pad(w_hh_p, ((0, Hp - H), (0, 0)))

    # Fold b_ih (all gates) + b_hh (r, z) into the x-side bias; keep b_hn apart
    # because it sits inside the r * (.) term of the n gate.
    b_x = jnp.concatenate([
        pad_vec(gate(b_ih, 0) + gate(b_hh, 0)),
        pad_vec(gate(b_ih, 1) + gate(b_hh, 1)),
        pad_vec(gate(b_ih, 2)),
    ])  # (3*Hp,)
    b_hn_p = pad_vec(gate(b_hh, 2)).reshape(1, Hp)

    # Input projection hoisted out of the kernel: K = D is tiny (poor MXU fill),
    # it has no cross-step dependence, and XLA produces it directly in the
    # time-major, lane-dense layout the serial kernel consumes.
    # Padded lanes of gx are exactly 0 (zero-padded weights/biases), so the
    # padded hidden lanes provably stay 0 through the recurrence.
    gx_tbg = jnp.einsum('btd,dg->tbg', x, w_ih_p) + b_x  # (T, B, 3*Hp) f32

    if batch_tile is None:
        batch_tile = _pick_batch_tile(B)
    assert B % batch_tile == 0, (B, batch_tile)
    time_chunk = _pick_time_chunk(T, max_time_unroll)
    grid = (B // batch_tile, T // time_chunk)

    # Explicit VMEM budget (double-buffered gx/out blocks + weights + h scratch)
    # with headroom; clamped under v7x's 64 MiB physical VMEM.
    est_bytes = 4 * (
        2 * time_chunk * batch_tile * 3 * Hp
        + 2 * time_chunk * batch_tile * Hp
        + 2 * (Hp * 3 * Hp + Hp)
        + batch_tile * Hp
    )
    vmem_limit = int(min(max(2 * est_bytes, 16 * 1024 * 1024), 64 * 1024 * 1024))

    out_tm = pl.pallas_call(
        gru_kernel,
        out_shape=jax.ShapeDtypeStruct((T, B, Hp), f32),
        grid=grid,
        in_specs=[
            pl.BlockSpec((time_chunk, batch_tile, 3 * Hp), lambda b, t: (t, b, 0)),
            pl.BlockSpec((Hp, 3 * Hp), lambda b, t: (0, 0)),
            pl.BlockSpec((1, Hp), lambda b, t: (0, 0)),
        ],
        out_specs=pl.BlockSpec((time_chunk, batch_tile, Hp), lambda b, t: (t, b, 0)),
        scratch_shapes=[pltpu.VMEM((batch_tile, Hp), f32)],
        compiler_params=pltpu.CompilerParams(
            dimension_semantics=("parallel", "arbitrary"),
            vmem_limit_bytes=vmem_limit,
        ),
    )(gx_tbg, w_hh_p, b_hn_p)

    # Back to batch-first and drop the zero hidden padding.
    # TODO(synk): if downstream tolerates a padded last dim, skip the slice to
    # save one HBM pass.
    return jnp.transpose(out_tm, (1, 0, 2))[:, :, :H]


def gru_reference(x_btd, w_ih, w_hh, b_ih, b_hh):
    """Pure-JAX reference (lax.scan) mirroring nn.GRU semantics."""
    B = x_btd.shape[0]
    H = w_ih.shape[0] // 3
    w_ir, w_iz, w_in = w_ih[:H], w_ih[H:2 * H], w_ih[2 * H:]
    w_hr, w_hz, w_hn = w_hh[:H], w_hh[H:2 * H], w_hh[2 * H:]
    b_ir, b_iz, b_in = b_ih[:H], b_ih[H:2 * H], b_ih[2 * H:]
    b_hr, b_hz, b_hn = b_hh[:H], b_hh[H:2 * H], b_hh[2 * H:]

    def step(h, x_t):
        r = jax.nn.sigmoid(x_t @ w_ir.T + b_ir + h @ w_hr.T + b_hr)
        z = jax.nn.sigmoid(x_t @ w_iz.T + b_iz + h @ w_hz.T + b_hz)
        n = jnp.tanh(x_t @ w_in.T + b_in + r * (h @ w_hn.T + b_hn))
        h_new = (1.0 - z) * n + z * h
        return h_new, h_new

    h0 = jnp.zeros((B, H), jnp.float32)
    _, ys = lax.scan(step, h0, jnp.transpose(x_btd, (1, 0, 2)))
    return jnp.transpose(ys, (1, 0, 2))


if __name__ == "__main__":
    # Small shapes consistent with the module: batch=2, seq=8, input_dim=4, hidden=32.
    B, T, D, H = 2, 8, 4, 32

    key = jax.random.PRNGKey(0)
    k_x, k_wih, k_whh, k_bih, k_bhh = jax.random.split(key, 5)

    # PyTorch nn.GRU default init: U(-1/sqrt(H), 1/sqrt(H)); gates stacked as 3H.
    bound = 1.0 / jnp.sqrt(jnp.float32(H))
    x = jax.random.normal(k_x, (B, T, D), dtype=jnp.float32)
    w_ih = jax.random.uniform(k_wih, (3 * H, D), jnp.float32, -bound, bound)
    w_hh = jax.random.uniform(k_whh, (3 * H, H), jnp.float32, -bound, bound)
    b_ih = jax.random.uniform(k_bih, (3 * H,), jnp.float32, -bound, bound)
    b_hh = jax.random.uniform(k_bhh, (3 * H,), jnp.float32, -bound, bound)

    out = jax.block_until_ready(gru_module_forward(x, w_ih, w_hh, b_ih, b_hh))
    ref = gru_reference(x, w_ih, w_hh, b_ih, b_hh)

    assert out.shape == (B, T, H), out.shape
    max_err = float(jnp.max(jnp.abs(out - ref)))
    assert jnp.allclose(out, ref, atol=1e-4, rtol=1e-4), (
        f"mismatch vs reference: max abs diff = {max_err}"
    )

    print("KERNEL_OK")
</pallas_src>

<mosaic_0001>
module attributes {stable_mosaic.version = 11 : i64} {
  func.func @gru_kernel(%arg0: i32, %arg1: i32, %arg2: memref<8x2x384xf32, #tpu.memory_space<vmem>>, %arg3: memref<128x384xf32, #tpu.memory_space<vmem>>, %arg4: memref<1x128xf32, #tpu.memory_space<vmem>>, %arg5: memref<8x2x128xf32, #tpu.memory_space<vmem>>, %arg6: memref<2x128xf32, #tpu.memory_space<vmem>>) attributes {dimension_semantics = [#tpu.dimension_semantics<parallel>, #tpu.dimension_semantics<arbitrary>], iteration_bounds = array<i64: 1, 1>, scalar_prefetch = 0 : i64, scratch_operands = 1 : i64, tpu.core_type = #tpu.core_type<tc>, window_params = [{transform_indices = @transform_0, window_bounds = array<i64: 8, 2, 384>}, {pipeline_mode = #tpu.pipeline_mode<synchronous>, transform_indices = @transform_1, window_bounds = array<i64: 128, 384>}, {pipeline_mode = #tpu.pipeline_mode<synchronous>, transform_indices = @transform_2, window_bounds = array<i64: 1, 128>}, {transform_indices = @transform_3, window_bounds = array<i64: 8, 2, 128>}]} {
    %c0_i32 = arith.constant 0 : i32
    %0 = arith.cmpi eq, %arg1, %c0_i32 : i32
    %1 = arith.extui %0 : i1 to i32
    %c0_i32_0 = arith.constant 0 : i32
    %2 = arith.cmpi ne, %1, %c0_i32_0 : i32
    scf.if %2 {
      %cst_112 = arith.constant 0.000000e+00 : f32
      %305 = vector.broadcast %cst_112 : f32 to vector<2x128xf32>
      %c0_113 = arith.constant 0 : index
      %c0_114 = arith.constant 0 : index
      %306 = vector.load %arg6[%c0_113, %c0_114] : memref<2x128xf32, #tpu.memory_space<vmem>>, vector<2x128xf32>
      tpu.vector_store %arg6[%c0_113, %c0_114], %305 {strides = array<i32>} : memref<2x128xf32, #tpu.memory_space<vmem>>, vector<2x128xf32>,
    } else {
    }
    %c0 = arith.constant 0 : index
    %c0_1 = arith.constant 0 : index
    %3 = vector.load %arg3[%c0, %c0_1] : memref<128x384xf32, #tpu.memory_space<vmem>>, vector<128x384xf32>
    %c0_2 = arith.constant 0 : index
    %c0_3 = arith.constant 0 : index
    %4 = vector.load %arg4[%c0_2, %c0_3] : memref<1x128xf32, #tpu.memory_space<vmem>>, vector<1x128xf32>
    %5 = vector.shape_cast %4 : vector<1x128xf32> to vector<1x128xf32>
    %6 = vector.broadcast %5 : vector<1x128xf32> to vector<2x128xf32>
    %c0_4 = arith.constant 0 : index
    %c0_5 = arith.constant 0 : index
    %7 = vector.load %arg6[%c0_4, %c0_5] : memref<2x128xf32, #tpu.memory_space<vmem>>, vector<2x128xf32>
    %c0_6 = arith.constant 0 : index
    %c0_7 = arith.constant 0 : index
    %c0_8 = arith.constant 0 : index
    %8 = vector.load %arg2[%c0_6, %c0_7, %c0_8] : memref<8x2x384xf32, #tpu.memory_space<vmem>>, vector<1x2x384xf32>
    %9 = vector.shape_cast %8 : vector<1x2x384xf32> to vector<2x384xf32>
    %cst = arith.constant dense<0.000000e+00> : vector<2x384xf32>
    %10 = tpu.matmul %7, %3, %cst {dimension_numbers = #tpu.dot_dimension_numbers<[1], [0], [0], [1], [0, 0, 1, 1], [], []>} : vector<2x128xf32>, vector<128x384xf32>, vector<2x384xf32> -> vector<2x384xf32>
    %11 = vector.extract_strided_slice %9 {offsets = [0, 0], sizes = [2, 128], strides = [1, 1]} : vector<2x384xf32> to vector<2x128xf32>
    %12 = vector.extract_strided_slice %10 {offsets = [0, 0], sizes = [2, 128], strides = [1, 1]} : vector<2x384xf32> to vector<2x128xf32>
    %13 = arith.addf %11, %12 : vector<2x128xf32>
    %cst_9 = arith.constant 5.000000e-01 : f32
    %14 = vector.broadcast %cst_9 : f32 to vector<2x128xf32>
    %15 = arith.mulf %14, %13 : vector<2x128xf32>
    %16 = math.tanh %15 : vector<2x128xf32>
    %cst_10 = arith.constant 1.000000e+00 : f32
    %17 = vector.broadcast %cst_10 : f32 to vector<2x128xf32>
    %18 = arith.addf %16, %17 : vector<2x128xf32>
    %cst_11 = arith.constant 5.000000e-01 : f32
    %19 = vector.broadcast %cst_11 : f32 to vector<2x128xf32>
    %20 = arith.mulf %19, %18 : vector<2x128xf32>
    %21 = vector.extract_strided_slice %9 {offsets = [0, 128], sizes = [2, 128], strides = [1, 1]} : vector<2x384xf32> to vector<2x128xf32>
    %22 = vector.extract_strided_slice %10 {offsets = [0, 128], sizes = [2, 128], strides = [1, 1]} : vector<2x384xf32> to vector<2x128xf32>
    %23 = arith.addf %21, %22 : vector<2x128xf32>
    %cst_12 = arith.constant 5.000000e-01 : f32
    %24 = vector.broadcast %cst_12 : f32 to vector<2x128xf32>
    %25 = arith.mulf %24, %23 : vector<2x128xf32>
    %26 = math.tanh %25 : vector<2x128xf32>
    %cst_13 = arith.constant 1.000000e+00 : f32
    %27 = vector.broadcast %cst_13 : f32 to vector<2x128xf32>
    %28 = arith.addf %26, %27 : vector<2x128xf32>
    %cst_14 = arith.constant 5.000000e-01 : f32
    %29 = vector.broadcast %cst_14 : f32 to vector<2x128xf32>
    %30 = arith.mulf %29, %28 : vector<2x128xf32>
    %31 = vector.extract_strided_slice %9 {offsets = [0, 256], sizes = [2, 128], strides = [1, 1]} : vector<2x384xf32> to vector<2x128xf32>
    %32 = vector.extract_strided_slice %10 {offsets = [0, 256], sizes = [2, 128], strides = [1, 1]} : vector<2x384xf32> to vector<2x128xf32>
    %33 = arith.addf %32, %6 : vector<2x128xf32>
    %34 = arith.mulf %20, %33 : vector<2x128xf32>
    %35 = arith.addf %31, %34 : vector<2x128xf32>
    %36 = math.tanh %35 : vector<2x128xf32>
    %cst_15 = arith.constant 1.000000e+00 : f32
    %37 = vector.broadcast %cst_15 : f32 to vector<2x128xf32>
    %38 = arith.subf %37, %30 : vector<2x128xf32>
    %39 = arith.mulf %38, %36 : vector<2x128xf32>
    %40 = arith.mulf %30, %7 : vector<2x128xf32>
    %41 = arith.addf %39, %40 : vector<2x128xf32>
    %c0_16 = arith.constant 0 : index
    %c0_17 = arith.constant 0 : index
    %c0_18 = arith.constant 0 : index
    %42 = vector.load %arg5[%c0_16, %c0_17, %c0_18] : memref<8x2x128xf32, #tpu.memory_space<vmem>>, vector<1x2x128xf32>
    %43 = vector.shape_cast %42 : vector<1x2x128xf32> to vector<2x128xf32>
    %44 = vector.shape_cast %41 : vector<2x128xf32> to vector<1x2x128xf32>
    tpu.vector_store %arg5[%c0_16, %c0_17, %c0_18], %44 {strides = array<i32>} : memref<8x2x128xf32, #tpu.memory_space<vmem>>, vector<1x2x128xf32>,
    %c1 = arith.constant 1 : index
    %c0_19 = arith.constant 0 : index
    %c0_20 = arith.constant 0 : index
    %45 = vector.load %arg2[%c1, %c0_19, %c0_20] : memref<8x2x384xf32, #tpu.memory_space<vmem>>, vector<1x2x384xf32>
    %46 = vector.shape_cast %45 : vector<1x2x384xf32> to vector<2x384xf32>
    %cst_21 = arith.constant dense<0.000000e+00> : vector<2x384xf32>
    %47 = tpu.matmul %41, %3, %cst_21 {dimension_numbers = #tpu.dot_dimension_numbers<[1], [0], [0], [1], [0, 0, 1, 1], [], []>} : vector<2x128xf32>, vector<128x384xf32>, vector<2x384xf32> -> vector<2x384xf32>
    %48 = vector.extract_strided_slice %46 {offsets = [0, 0], sizes = [2, 128], strides = [1, 1]} : vector<2x384xf32> to vector<2x128xf32>
    %49 = vector.extract_strided_slice %47 {offsets = [0, 0], sizes = [2, 128], strides = [1, 1]} : vector<2x384xf32> to vector<2x128xf32>
    %50 = arith.addf %48, %49 : vector<2x128xf32>
    %cst_22 = arith.constant 5.000000e-01 : f32
    %51 = vector.broadcast %cst_22 : f32 to vector<2x128xf32>
    %52 = arith.mulf %51, %50 : vector<2x128xf32>
    %53 = math.tanh %52 : vector<2x128xf32>
    %cst_23 = arith.constant 1.000000e+00 : f32
    %54 = vector.broadcast %cst_23 : f32 to vector<2x128xf32>
    %55 = arith.addf %53, %54 : vector<2x128xf32>
    %cst_24 = arith.constant 5.000000e-01 : f32
    %56 = vector.broadcast %cst_24 : f32 to vector<2x128xf32>
    %57 = arith.mulf %56, %55 : vector<2x128xf32>
    %58 = vector.extract_strided_slice %46 {offsets = [0, 128], sizes = [2, 128], strides = [1, 1]} : vector<2x384xf32> to vector<2x128xf32>
    %59 = vector.extract_strided_slice %47 {offsets = [0, 128], sizes = [2, 128], strides = [1, 1]} : vector<2x384xf32> to vector<2x128xf32>
    %60 = arith.addf %58, %59 : vector<2x128xf32>
    %cst_25 = arith.constant 5.000000e-01 : f32
    %61 = vector.broadcast %cst_25 : f32 to vector<2x128xf32>
    %62 = arith.mulf %61, %60 : vector<2x128xf32>
    %63 = math.tanh %62 : vector<2x128xf32>
    %cst_26 = arith.constant 1.000000e+00 : f32
    %64 = vector.broadcast %cst_26 : f32 to vector<2x128xf32>
    %65 = arith.addf %63, %64 : vector<2x128xf32>
    %cst_27 = arith.constant 5.000000e-01 : f32
    %66 = vector.broadcast %cst_27 : f32 to vector<2x128xf32>
    %67 = arith.mulf %66, %65 : vector<2x128xf32>
    %68 = vector.extract_strided_slice %46 {offsets = [0, 256], sizes = [2, 128], strides = [1, 1]} : vector<2x384xf32> to vector<2x128xf32>
    %69 = vector.extract_strided_slice %47 {offsets = [0, 256], sizes = [2, 128], strides = [1, 1]} : vector<2x384xf32> to vector<2x128xf32>
    %70 = arith.addf %69, %6 : vector<2x128xf32>
    %71 = arith.mulf %57, %70 : vector<2x128xf32>
    %72 = arith.addf %68, %71 : vector<2x128xf32>
    %73 = math.tanh %72 : vector<2x128xf32>
    %cst_28 = arith.constant 1.000000e+00 : f32
    %74 = vector.broadcast %cst_28 : f32 to vector<2x128xf32>
    %75 = arith.subf %74, %67 : vector<2x128xf32>
    %76 = arith.mulf %75, %73 : vector<2x128xf32>
    %77 = arith.mulf %67, %41 : vector<2x128xf32>
    %78 = arith.addf %76, %77 : vector<2x128xf32>
    %c1_29 = arith.constant 1 : index
    %c0_30 = arith.constant 0 : index
    %c0_31 = arith.constant 0 : index
    %79 = vector.load %arg5[%c1_29, %c0_30, %c0_31] : memref<8x2x128xf32, #tpu.memory_space<vmem>>, vector<1x2x128xf32>
    %80 = vector.shape_cast %79 : vector<1x2x128xf32> to vector<2x128xf32>
    %81 = vector.shape_cast %78 : vector<2x128xf32> to vector<1x2x128xf32>
    tpu.vector_store %arg5[%c1_29, %c0_30, %c0_31], %81 {strides = array<i32>} : memref<8x2x128xf32, #tpu.memory_space<vmem>>, vector<1x2x128xf32>,
    %c2 = arith.constant 2 : index
    %c0_32 = arith.constant 0 : index
    %c0_33 = arith.constant 0 : index
    %82 = vector.load %arg2[%c2, %c0_32, %c0_33] : memref<8x2x384xf32, #tpu.memory_space<vmem>>, vector<1x2x384xf32>
    %83 = vector.shape_cast %82 : vector<1x2x384xf32> to vector<2x384xf32>
    %cst_34 = arith.constant dense<0.000000e+00> : vector<2x384xf32>
    %84 = tpu.matmul %78, %3, %cst_34 {dimension_numbers = #tpu.dot_dimension_numbers<[1], [0], [0], [1], [0, 0, 1, 1], [], []>} : vector<2x128xf32>, vector<128x384xf32>, vector<2x384xf32> -> vector<2x384xf32>
    %85 = vector.extract_strided_slice %83 {offsets = [0, 0], sizes = [2, 128], strides = [1, 1]} : vector<2x384xf32> to vector<2x128xf32>
    %86 = vector.extract_strided_slice %84 {offsets = [0, 0], sizes = [2, 128], strides = [1, 1]} : vector<2x384xf32> to vector<2x128xf32>
    %87 = arith.addf %85, %86 : vector<2x128xf32>
    %cst_35 = arith.constant 5.000000e-01 : f32
    %88 = vector.broadcast %cst_35 : f32 to vector<2x128xf32>
    %89 = arith.mulf %88, %87 : vector<2x128xf32>
    %90 = math.tanh %89 : vector<2x128xf32>
    %cst_36 = arith.constant 1.000000e+00 : f32
    %91 = vector.broadcast %cst_36 : f32 to vector<2x128xf32>
    %92 = arith.addf %90, %91 : vector<2x128xf32>
    %cst_37 = arith.constant 5.000000e-01 : f32
    %93 = vector.broadcast %cst_37 : f32 to vector<2x128xf32>
    %94 = arith.mulf %93, %92 : vector<2x128xf32>
    %95 = vector.extract_strided_slice %83 {offsets = [0, 128], sizes = [2, 128], strides = [1, 1]} : vector<2x384xf32> to vector<2x128xf32>
    %96 = vector.extract_strided_slice %84 {offsets = [0, 128], sizes = [2, 128], strides = [1, 1]} : vector<2x384xf32> to vector<2x128xf32>
    %97 = arith.addf %95, %96 : vector<2x128xf32>
    %cst_38 = arith.constant 5.000000e-01 : f32
    %98 = vector.broadcast %cst_38 : f32 to vector<2x128xf32>
    %99 = arith.mulf %98, %97 : vector<2x128xf32>
    %100 = math.tanh %99 : vector<2x128xf32>
    %cst_39 = arith.constant 1.000000e+00 : f32
    %101 = vector.broadcast %cst_39 : f32 to vector<2x128xf32>
    %102 = arith.addf %100, %101 : vector<2x128xf32>
    %cst_40 = arith.constant 5.000000e-01 : f32
    %103 = vector.broadcast %cst_40 : f32 to vector<2x128xf32>
    %104 = arith.mulf %103, %102 : vector<2x128xf32>
    %105 = vector.extract_strided_slice %83 {offsets = [0, 256], sizes = [2, 128], strides = [1, 1]} : vector<2x384xf32> to vector<2x128xf32>
    %106 = vector.extract_strided_slice %84 {offsets = [0, 256], sizes = [2, 128], strides = [1, 1]} : vector<2x384xf32> to vector<2x128xf32>
    %107 = arith.addf %106, %6 : vector<2x128xf32>
    %108 = arith.mulf %94, %107 : vector<2x128xf32>
    %109 = arith.addf %105, %108 : vector<2x128xf32>
    %110 = math.tanh %109 : vector<2x128xf32>
    %cst_41 = arith.constant 1.000000e+00 : f32
    %111 = vector.broadcast %cst_41 : f32 to vector<2x128xf32>
    %112 = arith.subf %111, %104 : vector<2x128xf32>
    %113 = arith.mulf %112, %110 : vector<2x128xf32>
    %114 = arith.mulf %104, %78 : vector<2x128xf32>
    %115 = arith.addf %113, %114 : vector<2x128xf32>
    %c2_42 = arith.constant 2 : index
    %c0_43 = arith.constant 0 : index
    %c0_44 = arith.constant 0 : index
    %116 = vector.load %arg5[%c2_42, %c0_43, %c0_44] : memref<8x2x128xf32, #tpu.memory_space<vmem>>, vector<1x2x128xf32>
    %117 = vector.shape_cast %116 : vector<1x2x128xf32> to vector<2x128xf32>
    %118 = vector.shape_cast %115 : vector<2x128xf32> to vector<1x2x128xf32>
    tpu.vector_store %arg5[%c2_42, %c0_43, %c0_44], %118 {strides = array<i32>} : memref<8x2x128xf32, #tpu.memory_space<vmem>>, vector<1x2x128xf32>,
    %c3 = arith.constant 3 : index
    %c0_45 = arith.constant 0 : index
    %c0_46 = arith.constant 0 : index
    %119 = vector.load %arg2[%c3, %c0_45, %c0_46] : memref<8x2x384xf32, #tpu.memory_space<vmem>>, vector<1x2x384xf32>
    %120 = vector.shape_cast %119 : vector<1x2x384xf32> to vector<2x384xf32>
    %cst_47 = arith.constant dense<0.000000e+00> : vector<2x384xf32>
    %121 = tpu.matmul %115, %3, %cst_47 {dimension_numbers = #tpu.dot_dimension_numbers<[1], [0], [0], [1], [0, 0, 1, 1], [], []>} : vector<2x128xf32>, vector<128x384xf32>, vector<2x384xf32> -> vector<2x384xf32>
    %122 = vector.extract_strided_slice %120 {offsets = [0, 0], sizes = [2, 128], strides = [1, 1]} : vector<2x384xf32> to vector<2x128xf32>
    %123 = vector.extract_strided_slice %121 {offsets = [0, 0], sizes = [2, 128], strides = [1, 1]} : vector<2x384xf32> to vector<2x128xf32>
    %124 = arith.addf %122, %123 : vector<2x128xf32>
    %cst_48 = arith.constant 5.000000e-01 : f32
    %125 = vector.broadcast %cst_48 : f32 to vector<2x128xf32>
    %126 = arith.mulf %125, %124 : vector<2x128xf32>
    %127 = math.tanh %126 : vector<2x128xf32>
    %cst_49 = arith.constant 1.000000e+00 : f32
    %128 = vector.broadcast %cst_49 : f32 to vector<2x128xf32>
    %129 = arith.addf %127, %128 : vector<2x128xf32>
    %cst_50 = arith.constant 5.000000e-01 : f32
    %130 = vector.broadcast %cst_50 : f32 to vector<2x128xf32>
    %131 = arith.mulf %130, %129 : vector<2x128xf32>
    %132 = vector.extract_strided_slice %120 {offsets = [0, 128], sizes = [2, 128], strides = [1, 1]} : vector<2x384xf32> to vector<2x128xf32>
    %133 = vector.extract_strided_slice %121 {offsets = [0, 128], sizes = [2, 128], strides = [1, 1]} : vector<2x384xf32> to vector<2x128xf32>
    %134 = arith.addf %132, %133 : vector<2x128xf32>
    %cst_51 = arith.constant 5.000000e-01 : f32
    %135 = vector.broadcast %cst_51 : f32 to vector<2x128xf32>
    %136 = arith.mulf %135, %134 : vector<2x128xf32>
    %137 = math.tanh %136 : vector<2x128xf32>
    %cst_52 = arith.constant 1.000000e+00 : f32
    %138 = vector.broadcast %cst_52 : f32 to vector<2x128xf32>
    %139 = arith.addf %137, %138 : vector<2x128xf32>
    %cst_53 = arith.constant 5.000000e-01 : f32
    %140 = vector.broadcast %cst_53 : f32 to vector<2x128xf32>
    %141 = arith.mulf %140, %139 : vector<2x128xf32>
    %142 = vector.extract_strided_slice %120 {offsets = [0, 256], sizes = [2, 128], strides = [1, 1]} : vector<2x384xf32> to vector<2x128xf32>
    %143 = vector.extract_strided_slice %121 {offsets = [0, 256], sizes = [2, 128], strides = [1, 1]} : vector<2x384xf32> to vector<2x128xf32>
    %144 = arith.addf %143, %6 : vector<2x128xf32>
    %145 = arith.mulf %131, %144 : vector<2x128xf32>
    %146 = arith.addf %142, %145 : vector<2x128xf32>
    %147 = math.tanh %146 : vector<2x128xf32>
    %cst_54 = arith.constant 1.000000e+00 : f32
    %148 = vector.broadcast %cst_54 : f32 to vector<2x128xf32>
    %149 = arith.subf %148, %141 : vector<2x128xf32>
    %150 = arith.mulf %149, %147 : vector<2x128xf32>
    %151 = arith.mulf %141, %115 : vector<2x128xf32>
    %152 = arith.addf %150, %151 : vector<2x128xf32>
    %c3_55 = arith.constant 3 : index
    %c0_56 = arith.constant 0 : index
    %c0_57 = arith.constant 0 : index
    %153 = vector.load %arg5[%c3_55, %c0_56, %c0_57] : memref<8x2x128xf32, #tpu.memory_space<vmem>>, vector<1x2x128xf32>
    %154 = vector.shape_cast %153 : vector<1x2x128xf32> to vector<2x128xf32>
    %155 = vector.shape_cast %152 : vector<2x128xf32> to vector<1x2x128xf32>
    tpu.vector_store %arg5[%c3_55, %c0_56, %c0_57], %155 {strides = array<i32>} : memref<8x2x128xf32, #tpu.memory_space<vmem>>, vector<1x2x128xf32>,
    %c4 = arith.constant 4 : index
    %c0_58 = arith.constant 0 : index
    %c0_59 = arith.constant 0 : index
    %156 = vector.load %arg2[%c4, %c0_58, %c0_59] : memref<8x2x384xf32, #tpu.memory_space<vmem>>, vector<1x2x384xf32>
    %157 = vector.shape_cast %156 : vector<1x2x384xf32> to vector<2x384xf32>
    %cst_60 = arith.constant dense<0.000000e+00> : vector<2x384xf32>
    %158 = tpu.matmul %152, %3, %cst_60 {dimension_numbers = #tpu.dot_dimension_numbers<[1], [0], [0], [1], [0, 0, 1, 1], [], []>} : vector<2x128xf32>, vector<128x384xf32>, vector<2x384xf32> -> vector<2x384xf32>
    %159 = vector.extract_strided_slice %157 {offsets = [0, 0], sizes = [2, 128], strides = [1, 1]} : vector<2x384xf32> to vector<2x128xf32>
    %160 = vector.extract_strided_slice %158 {offsets = [0, 0], sizes = [2, 128], strides = [1, 1]} : vector<2x384xf32> to vector<2x128xf32>
    %161 = arith.addf %159, %160 : vector<2x128xf32>
    %cst_61 = arith.constant 5.000000e-01 : f32
    %162 = vector.broadcast %cst_61 : f32 to vector<2x128xf32>
    %163 = arith.mulf %162, %161 : vector<2x128xf32>
    %164 = math.tanh %163 : vector<2x128xf32>
    %cst_62 = arith.constant 1.000000e+00 : f32
    %165 = vector.broadcast %cst_62 : f32 to vector<2x128xf32>
    %166 = arith.addf %164, %165 : vector<2x128xf32>
    %cst_63 = arith.constant 5.000000e-01 : f32
    %167 = vector.broadcast %cst_63 : f32 to vector<2x128xf32>
    %168 = arith.mulf %167, %166 : vector<2x128xf32>
    %169 = vector.extract_strided_slice %157 {offsets = [0, 128], sizes = [2, 128], strides = [1, 1]} : vector<2x384xf32> to vector<2x128xf32>
    %170 = vector.extract_strided_slice %158 {offsets = [0, 128], sizes = [2, 128], strides = [1, 1]} : vector<2x384xf32> to vector<2x128xf32>
    %171 = arith.addf %169, %170 : vector<2x128xf32>
    %cst_64 = arith.constant 5.000000e-01 : f32
    %172 = vector.broadcast %cst_64 : f32 to vector<2x128xf32>
    %173 = arith.mulf %172, %171 : vector<2x128xf32>
    %174 = math.tanh %173 : vector<2x128xf32>
    %cst_65 = arith.constant 1.000000e+00 : f32
    %175 = vector.broadcast %cst_65 : f32 to vector<2x128xf32>
    %176 = arith.addf %174, %175 : vector<2x128xf32>
    %cst_66 = arith.constant 5.000000e-01 : f32
    %177 = vector.broadcast %cst_66 : f32 to vector<2x128xf32>
    %178 = arith.mulf %177, %176 : vector<2x128xf32>
    %179 = vector.extract_strided_slice %157 {offsets = [0, 256], sizes = [2, 128], strides = [1, 1]} : vector<2x384xf32> to vector<2x128xf32>
    %180 = vector.extract_strided_slice %158 {offsets = [0, 256], sizes = [2, 128], strides = [1, 1]} : vector<2x384xf32> to vector<2x128xf32>
    %181 = arith.addf %180, %6 : vector<2x128xf32>
    %182 = arith.mulf %168, %181 : vector<2x128xf32>
    %183 = arith.addf %179, %182 : vector<2x128xf32>
    %184 = math.tanh %183 : vector<2x128xf32>
    %cst_67 = arith.constant 1.000000e+00 : f32
    %185 = vector.broadcast %cst_67 : f32 to vector<2x128xf32>
    %186 = arith.subf %185, %178 : vector<2x128xf32>
    %187 = arith.mulf %186, %184 : vector<2x128xf32>
    %188 = arith.mulf %178, %152 : vector<2x128xf32>
    %189 = arith.addf %187, %188 : vector<2x128xf32>
    %c4_68 = arith.constant 4 : index
    %c0_69 = arith.constant 0 : index
    %c0_70 = arith.constant 0 : index
    %190 = vector.load %arg5[%c4_68, %c0_69, %c0_70] : memref<8x2x128xf32, #tpu.memory_space<vmem>>, vector<1x2x128xf32>
    %191 = vector.shape_cast %190 : vector<1x2x128xf32> to vector<2x128xf32>
    %192 = vector.shape_cast %189 : vector<2x128xf32> to vector<1x2x128xf32>
    tpu.vector_store %arg5[%c4_68, %c0_69, %c0_70], %192 {strides = array<i32>} : memref<8x2x128xf32, #tpu.memory_space<vmem>>, vector<1x2x128xf32>,
    %c5 = arith.constant 5 : index
    %c0_71 = arith.constant 0 : index
    %c0_72 = arith.constant 0 : index
    %193 = vector.load %arg2[%c5, %c0_71, %c0_72] : memref<8x2x384xf32, #tpu.memory_space<vmem>>, vector<1x2x384xf32>
    %194 = vector.shape_cast %193 : vector<1x2x384xf32> to vector<2x384xf32>
    %cst_73 = arith.constant dense<0.000000e+00> : vector<2x384xf32>
    %195 = tpu.matmul %189, %3, %cst_73 {dimension_numbers = #tpu.dot_dimension_numbers<[1], [0], [0], [1], [0, 0, 1, 1], [], []>} : vector<2x128xf32>, vector<128x384xf32>, vector<2x384xf32> -> vector<2x384xf32>
    %196 = vector.extract_strided_slice %194 {offsets = [0, 0], sizes = [2, 128], strides = [1, 1]} : vector<2x384xf32> to vector<2x128xf32>
    %197 = vector.extract_strided_slice %195 {offsets = [0, 0], sizes = [2, 128], strides = [1, 1]} : vector<2x384xf32> to vector<2x128xf32>
    %198 = arith.addf %196, %197 : vector<2x128xf32>
    %cst_74 = arith.constant 5.000000e-01 : f32
    %199 = vector.broadcast %cst_74 : f32 to vector<2x128xf32>
    %200 = arith.mulf %199, %198 : vector<2x128xf32>
    %201 = math.tanh %200 : vector<2x128xf32>
    %cst_75 = arith.constant 1.000000e+00 : f32
    %202 = vector.broadcast %cst_75 : f32 to vector<2x128xf32>
    %203 = arith.addf %201, %202 : vector<2x128xf32>
    %cst_76 = arith.constant 5.000000e-01 : f32
    %204 = vector.broadcast %cst_76 : f32 to vector<2x128xf32>
    %205 = arith.mulf %204, %203 : vector<2x128xf32>
    %206 = vector.extract_strided_slice %194 {offsets = [0, 128], sizes = [2, 128], strides = [1, 1]} : vector<2x384xf32> to vector<2x128xf32>
    %207 = vector.extract_strided_slice %195 {offsets = [0, 128], sizes = [2, 128], strides = [1, 1]} : vector<2x384xf32> to vector<2x128xf32>
    %208 = arith.addf %206, %207 : vector<2x128xf32>
    %cst_77 = arith.constant 5.000000e-01 : f32
    %209 = vector.broadcast %cst_77 : f32 to vector<2x128xf32>
    %210 = arith.mulf %209, %208 : vector<2x128xf32>
    %211 = math.tanh %210 : vector<2x128xf32>
    %cst_78 = arith.constant 1.000000e+00 : f32
    %212 = vector.broadcast %cst_78 : f32 to vector<2x128xf32>
    %213 = arith.addf %211, %212 : vector<2x128xf32>
    %cst_79 = arith.constant 5.000000e-01 : f32
    %214 = vector.broadcast %cst_79 : f32 to vector<2x128xf32>
    %215 = arith.mulf %214, %213 : vector<2x128xf32>
    %216 = vector.extract_strided_slice %194 {offsets = [0, 256], sizes = [2, 128], strides = [1, 1]} : vector<2x384xf32> to vector<2x128xf32>
    %217 = vector.extract_strided_slice %195 {offsets = [0, 256], sizes = [2, 128], strides = [1, 1]} : vector<2x384xf32> to vector<2x128xf32>
    %218 = arith.addf %217, %6 : vector<2x128xf32>
    %219 = arith.mulf %205, %218 : vector<2x128xf32>
    %220 = arith.addf %216, %219 : vector<2x128xf32>
    %221 = math.tanh %220 : vector<2x128xf32>
    %cst_80 = arith.constant 1.000000e+00 : f32
    %222 = vector.broadcast %cst_80 : f32 to vector<2x128xf32>
    %223 = arith.subf %222, %215 : vector<2x128xf32>
    %224 = arith.mulf %223, %221 : vector<2x128xf32>
    %225 = arith.mulf %215, %189 : vector<2x128xf32>
    %226 = arith.addf %224, %225 : vector<2x128xf32>
    %c5_81 = arith.constant 5 : index
    %c0_82 = arith.constant 0 : index
    %c0_83 = arith.constant 0 : index
    %227 = vector.load %arg5[%c5_81, %c0_82, %c0_83] : memref<8x2x128xf32, #tpu.memory_space<vmem>>, vector<1x2x128xf32>
    %228 = vector.shape_cast %227 : vector<1x2x128xf32> to vector<2x128xf32>
    %229 = vector.shape_cast %226 : vector<2x128xf32> to vector<1x2x128xf32>
    tpu.vector_store %arg5[%c5_81, %c0_82, %c0_83], %229 {strides = array<i32>} : memref<8x2x128xf32, #tpu.memory_space<vmem>>, vector<1x2x128xf32>,
    %c6 = arith.constant 6 : index
    %c0_84 = arith.constant 0 : index
    %c0_85 = arith.constant 0 : index
    %230 = vector.load %arg2[%c6, %c0_84, %c0_85] : memref<8x2x384xf32, #tpu.memory_space<vmem>>, vector<1x2x384xf32>
    %231 = vector.shape_cast %230 : vector<1x2x384xf32> to vector<2x384xf32>
    %cst_86 = arith.constant dense<0.000000e+00> : vector<2x384xf32>
    %232 = tpu.matmul %226, %3, %cst_86 {dimension_numbers = #tpu.dot_dimension_numbers<[1], [0], [0], [1], [0, 0, 1, 1], [], []>} : vector<2x128xf32>, vector<128x384xf32>, vector<2x384xf32> -> vector<2x384xf32>
    %233 = vector.extract_strided_slice %231 {offsets = [0, 0], sizes = [2, 128], strides = [1, 1]} : vector<2x384xf32> to vector<2x128xf32>
    %234 = vector.extract_strided_slice %232 {offsets = [0, 0], sizes = [2, 128], strides = [1, 1]} : vector<2x384xf32> to vector<2x128xf32>
    %235 = arith.addf %233, %234 : vector<2x128xf32>
    %cst_87 = arith.constant 5.000000e-01 : f32
    %236 = vector.broadcast %cst_87 : f32 to vector<2x128xf32>
    %237 = arith.mulf %236, %235 : vector<2x128xf32>
    %238 = math.tanh %237 : vector<2x128xf32>
    %cst_88 = arith.constant 1.000000e+00 : f32
    %239 = vector.broadcast %cst_88 : f32 to vector<2x128xf32>
    %240 = arith.addf %238, %239 : vector<2x128xf32>
    %cst_89 = arith.constant 5.000000e-01 : f32
    %241 = vector.broadcast %cst_89 : f32 to vector<2x128xf32>
    %242 = arith.mulf %241, %240 : vector<2x128xf32>
    %243 = vector.extract_strided_slice %231 {offsets = [0, 128], sizes = [2, 128], strides = [1, 1]} : vector<2x384xf32> to vector<2x128xf32>
    %244 = vector.extract_strided_slice %232 {offsets = [0, 128], sizes = [2, 128], strides = [1, 1]} : vector<2x384xf32> to vector<2x128xf32>
    %245 = arith.addf %243, %244 : vector<2x128xf32>
    %cst_90 = arith.constant 5.000000e-01 : f32
    %246 = vector.broadcast %cst_90 : f32 to vector<2x128xf32>
    %247 = arith.mulf %246, %245 : vector<2x128xf32>
    %248 = math.tanh %247 : vector<2x128xf32>
    %cst_91 = arith.constant 1.000000e+00 : f32
    %249 = vector.broadcast %cst_91 : f32 to vector<2x128xf32>
    %250 = arith.addf %248, %249 : vector<2x128xf32>
    %cst_92 = arith.constant 5.000000e-01 : f32
    %251 = vector.broadcast %cst_92 : f32 to vector<2x128xf32>
    %252 = arith.mulf %251, %250 : vector<2x128xf32>
    %253 = vector.extract_strided_slice %231 {offsets = [0, 256], sizes = [2, 128], strides = [1, 1]} : vector<2x384xf32> to vector<2x128xf32>
    %254 = vector.extract_strided_slice %232 {offsets = [0, 256], sizes = [2, 128], strides = [1, 1]} : vector<2x384xf32> to vector<2x128xf32>
    %255 = arith.addf %254, %6 : vector<2x128xf32>
    %256 = arith.mulf %242, %255 : vector<2x128xf32>
    %257 = arith.addf %253, %256 : vector<2x128xf32>
    %258 = math.tanh %257 : vector<2x128xf32>
    %cst_93 = arith.constant 1.000000e+00 : f32
    %259 = vector.broadcast %cst_93 : f32 to vector<2x128xf32>
    %260 = arith.subf %259, %252 : vector<2x128xf32>
    %261 = arith.mulf %260, %258 : vector<2x128xf32>
    %262 = arith.mulf %252, %226 : vector<2x128xf32>
    %263 = arith.addf %261, %262 : vector<2x128xf32>
    %c6_94 = arith.constant 6 : index
    %c0_95 = arith.constant 0 : index
    %c0_96 = arith.constant 0 : index
    %264 = vector.load %arg5[%c6_94, %c0_95, %c0_96] : memref<8x2x128xf32, #tpu.memory_space<vmem>>, vector<1x2x128xf32>
    %265 = vector.shape_cast %264 : vector<1x2x128xf32> to vector<2x128xf32>
    %266 = vector.shape_cast %263 : vector<2x128xf32> to vector<1x2x128xf32>
    tpu.vector_store %arg5[%c6_94, %c0_95, %c0_96], %266 {strides = array<i32>} : memref<8x2x128xf32, #tpu.memory_space<vmem>>, vector<1x2x128xf32>,
    %c7 = arith.constant 7 : index
    %c0_97 = arith.constant 0 : index
    %c0_98 = arith.constant 0 : index
    %267 = vector.load %arg2[%c7, %c0_97, %c0_98] : memref<8x2x384xf32, #tpu.memory_space<vmem>>, vector<1x2x384xf32>
    %268 = vector.shape_cast %267 : vector<1x2x384xf32> to vector<2x384xf32>
    %cst_99 = arith.constant dense<0.000000e+00> : vector<2x384xf32>
    %269 = tpu.matmul %263, %3, %cst_99 {dimension_numbers = #tpu.dot_dimension_numbers<[1], [0], [0], [1], [0, 0, 1, 1], [], []>} : vector<2x128xf32>, vector<128x384xf32>, vector<2x384xf32> -> vector<2x384xf32>
    %270 = vector.extract_strided_slice %268 {offsets = [0, 0], sizes = [2, 128], strides = [1, 1]} : vector<2x384xf32> to vector<2x128xf32>
    %271 = vector.extract_strided_slice %269 {offsets = [0, 0], sizes = [2, 128], strides = [1, 1]} : vector<2x384xf32> to vector<2x128xf32>
    %272 = arith.addf %270, %271 : vector<2x128xf32>
    %cst_100 = arith.constant 5.000000e-01 : f32
    %273 = vector.broadcast %cst_100 : f32 to vector<2x128xf32>
    %274 = arith.mulf %273, %272 : vector<2x128xf32>
    %275 = math.tanh %274 : vector<2x128xf32>
    %cst_101 = arith.constant 1.000000e+00 : f32
    %276 = vector.broadcast %cst_101 : f32 to vector<2x128xf32>
    %277 = arith.addf %275, %276 : vector<2x128xf32>
    %cst_102 = arith.constant 5.000000e-01 : f32
    %278 = vector.broadcast %cst_102 : f32 to vector<2x128xf32>
    %279 = arith.mulf %278, %277 : vector<2x128xf32>
    %280 = vector.extract_strided_slice %268 {offsets = [0, 128], sizes = [2, 128], strides = [1, 1]} : vector<2x384xf32> to vector<2x128xf32>
    %281 = vector.extract_strided_slice %269 {offsets = [0, 128], sizes = [2, 128], strides = [1, 1]} : vector<2x384xf32> to vector<2x128xf32>
    %282 = arith.addf %280, %281 : vector<2x128xf32>
    %cst_103 = arith.constant 5.000000e-01 : f32
    %283 = vector.broadcast %cst_103 : f32 to vector<2x128xf32>
    %284 = arith.mulf %283, %282 : vector<2x128xf32>
    %285 = math.tanh %284 : vector<2x128xf32>
    %cst_104 = arith.constant 1.000000e+00 : f32
    %286 = vector.broadcast %cst_104 : f32 to vector<2x128xf32>
    %287 = arith.addf %285, %286 : vector<2x128xf32>
    %cst_105 = arith.constant 5.000000e-01 : f32
    %288 = vector.broadcast %cst_105 : f32 to vector<2x128xf32>
    %289 = arith.mulf %288, %287 : vector<2x128xf32>
    %290 = vector.extract_strided_slice %268 {offsets = [0, 256], sizes = [2, 128], strides = [1, 1]} : vector<2x384xf32> to vector<2x128xf32>
    %291 = vector.extract_strided_slice %269 {offsets = [0, 256], sizes = [2, 128], strides = [1, 1]} : vector<2x384xf32> to vector<2x128xf32>
    %292 = arith.addf %291, %6 : vector<2x128xf32>
    %293 = arith.mulf %279, %292 : vector<2x128xf32>
    %294 = arith.addf %290, %293 : vector<2x128xf32>
    %295 = math.tanh %294 : vector<2x128xf32>
    %cst_106 = arith.constant 1.000000e+00 : f32
    %296 = vector.broadcast %cst_106 : f32 to vector<2x128xf32>
    %297 = arith.subf %296, %289 : vector<2x128xf32>
    %298 = arith.mulf %297, %295 : vector<2x128xf32>
    %299 = arith.mulf %289, %263 : vector<2x128xf32>
    %300 = arith.addf %298, %299 : vector<2x128xf32>
    %c7_107 = arith.constant 7 : index
    %c0_108 = arith.constant 0 : index
    %c0_109 = arith.constant 0 : index
    %301 = vector.load %arg5[%c7_107, %c0_108, %c0_109] : memref<8x2x128xf32, #tpu.memory_space<vmem>>, vector<1x2x128xf32>
    %302 = vector.shape_cast %301 : vector<1x2x128xf32> to vector<2x128xf32>
    %303 = vector.shape_cast %300 : vector<2x128xf32> to vector<1x2x128xf32>
    tpu.vector_store %arg5[%c7_107, %c0_108, %c0_109], %303 {strides = array<i32>} : memref<8x2x128xf32, #tpu.memory_space<vmem>>, vector<1x2x128xf32>,
    %c0_110 = arith.constant 0 : index
    %c0_111 = arith.constant 0 : index
    %304 = vector.load %arg6[%c0_110, %c0_111] : memref<2x128xf32, #tpu.memory_space<vmem>>, vector<2x128xf32>
    tpu.vector_store %arg6[%c0_110, %c0_111], %300 {strides = array<i32>} : memref<2x128xf32, #tpu.memory_space<vmem>>, vector<2x128xf32>,
    return
  }
  func.func @transform_0(%arg0: i32, %arg1: i32) -> (i32, i32, i32) {
    %c0_i32 = arith.constant 0 : i32
    %c0_i32_0 = arith.constant 0 : i32
    return %arg1, %arg0, %c0_i32 : i32, i32, i32
  }
  func.func @transform_1(%arg0: i32, %arg1: i32) -> (i32, i32) {
    %c0_i32 = arith.constant 0 : i32
    %c0_i32_0 = arith.constant 0 : i32
    %c0_i32_1 = arith.constant 0 : i32
    return %c0_i32, %c0_i32_0 : i32, i32
  }
  func.func @transform_2(%arg0: i32, %arg1: i32) -> (i32, i32) {
    %c0_i32 = arith.constant 0 : i32
    %c0_i32_0 = arith.constant 0 : i32
    %c0_i32_1 = arith.constant 0 : i32
    return %c0_i32, %c0_i32_0 : i32, i32
  }
  func.func @transform_3(%arg0: i32, %arg1: i32) -> (i32, i32, i32) {
    %c0_i32 = arith.constant 0 : i32
    %c0_i32_0 = arith.constant 0 : i32
    return %arg1, %arg0, %c0_i32 : i32, i32, i32
  }
}

</mosaic_0001>

<bundles_post_ra>
// kernel: tpu_custom_call.1
= control target key start
LH: loop header
LB: loop body
LE: loop exit
PB: predicated region body
PF: predicated region fallthrough
CT: control target
= control target key end

     0   :  { %8 = vsyncpa [#allocation4], 0  ;;  %s1523_s0 = inlined_call_operand.hbm [shape: f32[8,2,384], index: 0, kind: input, shape index: {}]   ;;  %s1524_s1 = inlined_call_operand.hbm [shape: f32[128,384], index: 1, kind: input, shape index: {}]   ;;  %s1525_s2 = inlined_call_operand.vmem [shape: f32[1,128], index: 2, kind: input, shape index: {}]   ;;  %s1526_s3 = inlined_call_operand.hbm [shape: f32[8,2,128], index: 3, kind: output, shape index: {}]  }
   0x1   :  { %9 = vsyncpa [#allocation7], 0 }
   0x2   :  { %10 = vsyncpa [#allocation5], 0  ;;  %s15_s14 = sshll.u32 %s1523_s0, 4  ;;  %s969_s15 = smov [#allocation3]   ;;  %s16_s14 = int_to_ptr.hbm [resolvable:$true] %s15_s14 }
   0x3   :  { %s17_s16 = sshll.u32 %s969_s15, 4  ;;  %s28_s19 = sshll.u32 %s1524_s1, 4  ;;  %s18_s16 = int_to_ptr.vmem [resolvable:$true] %s17_s16  ;;  %s29_s19 = int_to_ptr.hbm [resolvable:$true] %s28_s19 }
   0x4   :  { %s970_s20 = smov 96   ;;  %s971_s21 = smov 6  }
   0x5   :  { %23 = dma.hbm_to_vmem [thread:$0]  %s16_s14, 768, %s18_s16, [#allocation4], %s970_s20, %s970_s20, %s971_s21  }
   0x6   :  { %s972_s22 = smov [#allocation6]   ;;  %s973_s24 = smov 384  }
   0x7   :  { %s30_s23 = sshll.u32 %s972_s22, 4  ;;  %s974_s25 = smov 24   ;;  %s31_s23 = int_to_ptr.vmem [resolvable:$true] %s30_s23 }
   0x8   :  { %36 = dma.hbm_to_vmem [thread:$0]  %s29_s19, 6144, %s31_s23, [#allocation7], %s973_s24, %s973_s24, %s974_s25  }
   0x9   :  { %963 = dma.done.wait [#allocation4], 768  }
   0xa   :  { %964 = vsyncadd [#allocation4], 4294966528 }
   0xb   :  { %965 = dma.done.wait [#allocation7], 6144  }
   0xc   :  { %966 = vsyncadd [#allocation7], 4294961152  ;;  %v975_v0 = vmov 0.0   ;;  %v1005_v1 = vld [vmem:[#allocation6 + $0x168] sm:$0xff]  ;;  %v1007_v2 = vld [vmem:[#allocation6 + $0x150] sm:$0xff]  ;;  %s806_s29 = sshll.u32 %s1526_s3, 4  ;;  %s807_s29 = int_to_ptr.hbm [resolvable:$true] %s806_s29 }
   0xd   :  { %51 = vst [vmem:[#allocation2] sm:$0x3] %v975_v0  ;;  %106 = vmatpush.msra.mxu0 %v1005_v1  ;;  %v1010_v3 = vld [vmem:[#allocation6 + $0x178] sm:$0xff]  ;;  %192 = vmatpush.msra.mxu3 %v1005_v1  ;;  %v1016_v5 = vld [vmem:[#allocation6 + $0x170] sm:$0xff]  ;;  %v1018_v6 = vld [vmem:[#allocation6 + $0x160] sm:$0xff]  ;;  %s977_s30 = smov 32  }
   0xe   :  { %v1013_v4 = vld [vmem:[#allocation6 + $0x138] sm:$0xff]  ;;  %146 = vmatpush.msra.mxu2 %v1010_v3  ;;  %126 = vmatpush.msra.mxu1 %v1016_v5  ;;  %v1024_v8 = vld [vmem:[#allocation6 + $0x148] sm:$0xff]  ;;  %v1026_v9 = vld [vmem:[#allocation6 + $0x120] sm:$0xff]  ;;  %s978_s4 = smov 2  }
   0xf   :  { %107 = vmatpush.msra.mxu0 %v1007_v2  ;;  %v1022_v7 = vld [vmem:[#allocation6 + $0x158] sm:$0xff]  ;;  %v1029_v10 = vld [vmem:[#allocation6 + $0x140] sm:$0xff]  ;;  %193 = vmatpush.msra.mxu3 %v1007_v2  ;;  %v1034_v11 = vld [vmem:[#allocation6 + $0x130] sm:$0xff] }
  0x10   :  { %147 = vmatpush.msra.mxu2 %v1018_v6  ;;  %127 = vmatpush.msra.mxu1 %v1022_v7  ;;  %v1036_v12 = vld [vmem:[#allocation6 + $0x108] sm:$0xff]  ;;  %v1044_v14 = vld [vmem:[#allocation6 + $0x118] sm:$0xff]  ;;  %v1046_v15 = vld [vmem:[#allocation6 + $0xf0] sm:$0xff] }
  0x11   :  { %108 = vmatpush.msra.mxu0 %v1013_v4  ;;  %v1039_v13 = vld [vmem:[#allocation6 + $0x128] sm:$0xff]  ;;  %194 = vmatpush.msra.mxu3 %v1013_v4  ;;  %v1049_v16 = vld [vmem:[#allocation6 + $0x110] sm:$0xff]  ;;  %v1054_v17 = vld [vmem:[#allocation6 + $0x100] sm:$0xff] }
  0x12   :  { %148 = vmatpush.msra.mxu2 %v1024_v8  ;;  %128 = vmatpush.msra.mxu1 %v1029_v10  ;;  %v1056_v18 = vld [vmem:[#allocation6 + $0xd8] sm:$0xff]  ;;  %v1064_v20 = vld [vmem:[#allocation6 + $0xe8] sm:$0xff]  ;;  %v1066_v21 = vld [vmem:[#allocation6 + $0xc0] sm:$0xff] }
  0x13   :  { %109 = vmatpush.msra.mxu0 %v1026_v9  ;;  %195 = vmatpush.msra.mxu3 %v1026_v9  ;;  %v1059_v19 = vld [vmem:[#allocation6 + $0xf8] sm:$0xff]  ;;  %v1069_v22 = vld [vmem:[#allocation6 + $0xe0] sm:$0xff]  ;;  %v1074_v23 = vld [vmem:[#allocation6 + $0xd0] sm:$0xff] }
  0x14   :  { %149 = vmatpush.msra.mxu2 %v1034_v11  ;;  %129 = vmatpush.msra.mxu1 %v1039_v13  ;;  %v1076_v24 = vld [vmem:[#allocation6 + $0xa8] sm:$0xff]  ;;  %v1084_v26 = vld [vmem:[#allocation6 + $0xb8] sm:$0xff]  ;;  %v1086_v27 = vld [vmem:[#allocation6 + $0x90] sm:$0xff] }
  0x15   :  { %110 = vmatpush.msra.mxu0 %v1036_v12  ;;  %196 = vmatpush.msra.mxu3 %v1036_v12  ;;  %v1079_v25 = vld [vmem:[#allocation6 + $0xc8] sm:$0xff]  ;;  %v1089_v28 = vld [vmem:[#allocation6 + $0xb0] sm:$0xff]  ;;  %v1094_v29 = vld [vmem:[#allocation6 + $0xa0] sm:$0xff] }
  0x16   :  { %150 = vmatpush.msra.mxu2 %v1044_v14  ;;  %130 = vmatpush.msra.mxu1 %v1049_v16  ;;  %v1096_v30 = vld [vmem:[#allocation6 + $0x78] sm:$0xff]  ;;  %v1104_v32 = vld [vmem:[#allocation6 + $0x88] sm:$0xff]  ;;  %v1106_v33 = vld [vmem:[#allocation6 + $0x60] sm:$0xff] }
  0x17   :  { %111 = vmatpush.msra.mxu0 %v1046_v15  ;;  %197 = vmatpush.msra.mxu3 %v1046_v15  ;;  %v1099_v31 = vld [vmem:[#allocation6 + $0x98] sm:$0xff]  ;;  %v1109_v34 = vld [vmem:[#allocation6 + $0x80] sm:$0xff]  ;;  %v1114_v35 = vld [vmem:[#allocation6 + $0x70] sm:$0xff] }
  0x18   :  { %151 = vmatpush.msra.mxu2 %v1054_v17  ;;  %131 = vmatpush.msra.mxu1 %v1059_v19  ;;  %v1116_v36 = vld [vmem:[#allocation6 + $0x48] sm:$0xff]  ;;  %v1124_v38 = vld [vmem:[#allocation6 + $0x58] sm:$0xff]  ;;  %v1126_v39 = vld [vmem:[#allocation6 + $0x30] sm:$0xff] }
  0x19   :  { %112 = vmatpush.msra.mxu0 %v1056_v18  ;;  %198 = vmatpush.msra.mxu3 %v1056_v18  ;;  %v1119_v37 = vld [vmem:[#allocation6 + $0x68] sm:$0xff]  ;;  %v1129_v40 = vld [vmem:[#allocation6 + $0x50] sm:$0xff]  ;;  %v1134_v41 = vld [vmem:[#allocation6 + $0x40] sm:$0xff] }
  0x1a   :  { %152 = vmatpush.msra.mxu2 %v1064_v20  ;;  %132 = vmatpush.msra.mxu1 %v1069_v22  ;;  %v1136_v42 = vld [vmem:[#allocation6 + $0x18] sm:$0xff]  ;;  %v1144_v44 = vld [vmem:[#allocation6 + $0x28] sm:$0xff]  ;;  %v1146_v45 = vld [vmem:[#allocation6] sm:$0xff] }
  0x1b   :  { %113 = vmatpush.msra.mxu0 %v1066_v21  ;;  %199 = vmatpush.msra.mxu3 %v1066_v21  ;;  %1539 = vst [vmem:[#allocation12_spill] sm:$0xff] %v1136_v42  ;;  %v1139_v43 = vld [vmem:[#allocation6 + $0x38] sm:$0xff]  ;;  %v1149_v46 = vld [vmem:[#allocation6 + $0x20] sm:$0xff]  ;;  %v1153_v47 = vld [vmem:[#allocation2] sm:$0x3] }
  0x1c   :  { %153 = vmatpush.msra.mxu2 %v1074_v23  ;;  %133 = vmatpush.msra.mxu1 %v1079_v25  ;;  %1540 = vst [vmem:[#allocation13_spill] sm:$0xff] %v1144_v44  ;;  %v1156_v48 = vld [vmem:[#allocation6 + $0x10] sm:$0xff]  ;;  %v1159_v49 = vld [vmem:[#allocation6 + $0x8] sm:$0xff] }
  0x1d   :  { %114 = vmatpush.msra.mxu0 %v1076_v24  ;;  %200 = vmatpush.msra.mxu3 %v1076_v24  ;;  %1541 = vst [vmem:[#allocation14_spill] sm:$0xff] %v1146_v45  ;;  %v105_v50 = vld [vmem:[#allocation3] sm:$0x3f]  ;;  %v1285_v58 = vld [vmem:[%s1525_s2] ss:$0 sm:$0xff]  ;;  %s976_s2 = smov [#allocation8]  }
  0x1e   :  { %154 = vmatpush.msra.mxu2 %v1084_v26  ;;  %134 = vmatpush.msra.mxu1 %v1089_v28  ;;  %1542 = vst [vmem:[#allocation15_spill] sm:$0xff] %v1149_v46  ;;  %v172_v51 = vrot.slane %v105_v50, 2  ;;  %s804_s26 = sshll.u32 %s976_s2, 4  ;;  %s805_s26 = int_to_ptr.vmem [resolvable:$true] %s804_s26 }
  0x1f   :  { %115 = vmatpush.msra.mxu0 %v1086_v27  ;;  %201 = vmatpush.msra.mxu3 %v1086_v27  ;;  %1543 = vst [vmem:[#allocation16_spill] sm:$0xff] %v1156_v48 }
  0x20   :  { %155 = vmatpush.msra.mxu2 %v1094_v29  ;;  %135 = vmatpush.msra.mxu1 %v1099_v31  ;;  %1544 = vst [vmem:[#allocation17_spill] sm:$0xff] %v1159_v49 }
  0x21   :  { %116 = vmatpush.msra.mxu0 %v1096_v30  ;;  %202 = vmatpush.msra.mxu3 %v1096_v30 }
  0x22   :  { %156 = vmatpush.msra.mxu2 %v1104_v32  ;;  %136 = vmatpush.msra.mxu1 %v1109_v34 }
  0x23   :  { %117 = vmatpush.msra.mxu0 %v1106_v33  ;;  %203 = vmatpush.msra.mxu3 %v1106_v33 }
  0x24   :  { %157 = vmatpush.msra.mxu2 %v1114_v35  ;;  %137 = vmatpush.msra.mxu1 %v1119_v37 }
  0x25   :  { %118 = vmatpush.msra.mxu0 %v1116_v36  ;;  %204 = vmatpush.msra.mxu3 %v1116_v36 }
  0x26   :  { %158 = vmatpush.msra.mxu2 %v1124_v38  ;;  %138 = vmatpush.msra.mxu1 %v1129_v40 }
  0x27   :  { %119 = vmatpush.msra.mxu0 %v1126_v39  ;;  %205 = vmatpush.msra.mxu3 %v1126_v39 }
  0x28   :  { %159 = vmatpush.msra.mxu2 %v1134_v41  ;;  %139 = vmatpush.msra.mxu1 %v1139_v43 }
  0x29   :  { %120 = vmatpush.msra.mxu0 %v1136_v42  ;;  %206 = vmatpush.msra.mxu3 %v1136_v42 }
  0x2a   :  { %160 = vmatpush.msra.mxu2 %v1144_v44  ;;  %140 = vmatpush.msra.mxu1 %v1149_v46 }
  0x2b   :  { %121 = vmatpush.msra.mxu0 %v1146_v45  ;;  %207 = vmatpush.msra.mxu3 %v1146_v45 }
  0x2c   :  { %122 = vmatmul.f32.vlgmr.msra.gmra.mxu0 %v1153_v47  ;;  %161 = vmatpush.msra.mxu2 %v1156_v48 }
  0x2d   :  { %162 = vmatmul.f32.vlgmr.msra.gmra.mxu2 %v1153_v47  ;;  %141 = vmatpush.msra.mxu1 %v1159_v49 }
  0x2e   :  { %142 = vmatmul.f32.vlgmr.msra.gmra.mxu1 %v1153_v47  ;;  %212 = vmatpush.msrb.mxu0 %v1016_v5 }
  0x2f   :  { %232 = vmatpush.msrb.mxu1 %v1010_v3  ;;  %279 = vmatpush.msrb.mxu2 %v1005_v1 }
  0x30   :  { %213 = vmatpush.msrb.mxu0 %v1022_v7  ;;  %299 = vmatpush.msrb.mxu3 %v1016_v5 }
  0x31   :  { %233 = vmatpush.msrb.mxu1 %v1018_v6  ;;  %280 = vmatpush.msrb.mxu2 %v1007_v2 }
  0x32   :  { %214 = vmatpush.msrb.mxu0 %v1029_v10  ;;  %300 = vmatpush.msrb.mxu3 %v1022_v7 }
  0x33   :  { %234 = vmatpush.msrb.mxu1 %v1024_v8  ;;  %281 = vmatpush.msrb.mxu2 %v1013_v4 }
  0x34   :  { %215 = vmatpush.msrb.mxu0 %v1039_v13  ;;  %301 = vmatpush.msrb.mxu3 %v1029_v10 }
  0x35   :  { %235 = vmatpush.msrb.mxu1 %v1034_v11  ;;  %282 = vmatpush.msrb.mxu2 %v1026_v9 }
  0x36   :  { %216 = vmatpush.msrb.mxu0 %v1049_v16  ;;  %302 = vmatpush.msrb.mxu3 %v1039_v13 }
  0x37   :  { %236 = vmatpush.msrb.mxu1 %v1044_v14  ;;  %283 = vmatpush.msrb.mxu2 %v1036_v12 }
  0x38   :  { %217 = vmatpush.msrb.mxu0 %v1059_v19  ;;  %303 = vmatpush.msrb.mxu3 %v1049_v16 }
  0x39   :  { %237 = vmatpush.msrb.mxu1 %v1054_v17  ;;  %284 = vmatpush.msrb.mxu2 %v1046_v15 }
  0x3a   :  { %218 = vmatpush.msrb.mxu0 %v1069_v22  ;;  %304 = vmatpush.msrb.mxu3 %v1059_v19 }
  0x3b   :  { %238 = vmatpush.msrb.mxu1 %v1064_v20  ;;  %285 = vmatpush.msrb.mxu2 %v1056_v18 }
  0x3c   :  { %219 = vmatpush.msrb.mxu0 %v1079_v25  ;;  %305 = vmatpush.msrb.mxu3 %v1069_v22 }
  0x3d   :  { %239 = vmatpush.msrb.mxu1 %v1074_v23  ;;  %286 = vmatpush.msrb.mxu2 %v1066_v21 }
  0x3e   :  { %220 = vmatpush.msrb.mxu0 %v1089_v28  ;;  %306 = vmatpush.msrb.mxu3 %v1079_v25 }
  0x3f   :  { %240 = vmatpush.msrb.mxu1 %v1084_v26  ;;  %287 = vmatpush.msrb.mxu2 %v1076_v24 }
  0x40   :  { %221 = vmatpush.msrb.mxu0 %v1099_v31  ;;  %307 = vmatpush.msrb.mxu3 %v1089_v28 }
  0x41   :  { %241 = vmatpush.msrb.mxu1 %v1094_v29  ;;  %288 = vmatpush.msrb.mxu2 %v1086_v27 }
  0x42   :  { %222 = vmatpush.msrb.mxu0 %v1109_v34  ;;  %308 = vmatpush.msrb.mxu3 %v1099_v31 }
  0x43   :  { %242 = vmatpush.msrb.mxu1 %v1104_v32  ;;  %289 = vmatpush.msrb.mxu2 %v1096_v30 }
  0x44   :  { %223 = vmatpush.msrb.mxu0 %v1119_v37  ;;  %309 = vmatpush.msrb.mxu3 %v1109_v34 }
  0x45   :  { %243 = vmatpush.msrb.mxu1 %v1114_v35  ;;  %290 = vmatpush.msrb.mxu2 %v1106_v33 }
  0x46   :  { %224 = vmatpush.msrb.mxu0 %v1129_v40  ;;  %310 = vmatpush.msrb.mxu3 %v1119_v37 }
  0x47   :  { %244 = vmatpush.msrb.mxu1 %v1124_v38  ;;  %291 = vmatpush.msrb.mxu2 %v1116_v36 }
  0x48   :  { %225 = vmatpush.msrb.mxu0 %v1139_v43  ;;  %311 = vmatpush.msrb.mxu3 %v1129_v40 }
  0x49   :  { %245 = vmatpush.msrb.mxu1 %v1134_v41  ;;  %292 = vmatpush.msrb.mxu2 %v1126_v39 }
  0x4a   :  { %226 = vmatpush.msrb.mxu0 %v1149_v46  ;;  %312 = vmatpush.msrb.mxu3 %v1139_v43 }
  0x4b   :  { %246 = vmatpush.msrb.mxu1 %v1144_v44  ;;  %293 = vmatpush.msrb.mxu2 %v1136_v42 }
  0x4c   :  { %227 = vmatpush.msrb.mxu0 %v1159_v49  ;;  %313 = vmatpush.msrb.mxu3 %v1149_v46 }
  0x4d   :  { %247 = vmatpush.msrb.mxu1 %v1156_v48  ;;  %294 = vmatpush.msrb.mxu2 %v1146_v45 }
  0x4e   :  { %319 = vmatpush.msra.mxu0 %v1010_v3  ;;  %314 = vmatpush.msrb.mxu3 %v1159_v49 }
  0x4f   :  { %366 = vmatpush.msra.mxu1 %v1005_v1  ;;  %386 = vmatpush.msra.mxu2 %v1016_v5 }
  0x50   :  { %320 = vmatpush.msra.mxu0 %v1018_v6 }
  0x51   :  { %367 = vmatpush.msra.mxu1 %v1007_v2  ;;  %387 = vmatpush.msra.mxu2 %v1022_v7 }
  0x52   :  { %321 = vmatpush.msra.mxu0 %v1024_v8 }
  0x53   :  { %368 = vmatpush.msra.mxu1 %v1013_v4  ;;  %388 = vmatpush.msra.mxu2 %v1029_v10 }
  0x54   :  { %322 = vmatpush.msra.mxu0 %v1034_v11 }
  0x55   :  { %369 = vmatpush.msra.mxu1 %v1026_v9  ;;  %389 = vmatpush.msra.mxu2 %v1039_v13 }
  0x56   :  { %323 = vmatpush.msra.mxu0 %v1044_v14 }
  0x57   :  { %370 = vmatpush.msra.mxu1 %v1036_v12  ;;  %390 = vmatpush.msra.mxu2 %v1049_v16 }
  0x58   :  { %324 = vmatpush.msra.mxu0 %v1054_v17 }
  0x59   :  { %371 = vmatpush.msra.mxu1 %v1046_v15  ;;  %391 = vmatpush.msra.mxu2 %v1059_v19 }
  0x5a   :  { %325 = vmatpush.msra.mxu0 %v1064_v20 }
  0x5b   :  { %372 = vmatpush.msra.mxu1 %v1056_v18  ;;  %392 = vmatpush.msra.mxu2 %v1069_v22 }
  0x5c   :  { %326 = vmatpush.msra.mxu0 %v1074_v23 }
  0x5d   :  { %373 = vmatpush.msra.mxu1 %v1066_v21  ;;  %393 = vmatpush.msra.mxu2 %v1079_v25 }
  0x5e   :  { %327 = vmatpush.msra.mxu0 %v1084_v26 }
  0x5f   :  { %374 = vmatpush.msra.mxu1 %v1076_v24  ;;  %394 = vmatpush.msra.mxu2 %v1089_v28 }
  0x60   :  { %328 = vmatpush.msra.mxu0 %v1094_v29 }
  0x61   :  { %375 = vmatpush.msra.mxu1 %v1086_v27  ;;  %395 = vmatpush.msra.mxu2 %v1099_v31 }
  0x62   :  { %329 = vmatpush.msra.mxu0 %v1104_v32 }
  0x63   :  { %376 = vmatpush.msra.mxu1 %v1096_v30  ;;  %396 = vmatpush.msra.mxu2 %v1109_v34 }
  0x64   :  { %330 = vmatpush.msra.mxu0 %v1114_v35 }
  0x65   :  { %377 = vmatpush.msra.mxu1 %v1106_v33  ;;  %397 = vmatpush.msra.mxu2 %v1119_v37 }
  0x66   :  { %331 = vmatpush.msra.mxu0 %v1124_v38 }
  0x67   :  { %378 = vmatpush.msra.mxu1 %v1116_v36  ;;  %398 = vmatpush.msra.mxu2 %v1129_v40 }
  0x68   :  { %332 = vmatpush.msra.mxu0 %v1134_v41 }
  0x69   :  { %379 = vmatpush.msra.mxu1 %v1126_v39  ;;  %399 = vmatpush.msra.mxu2 %v1139_v43 }
  0x6a   :  { %333 = vmatpush.msra.mxu0 %v1144_v44 }
  0x6b   :  { %380 = vmatpush.msra.mxu1 %v1136_v42  ;;  %400 = vmatpush.msra.mxu2 %v1149_v46 }
  0x6c   :  { %334 = vmatpush.msra.mxu0 %v1156_v48 }
  0x6d   :  { %381 = vmatpush.msra.mxu1 %v1146_v45  ;;  %401 = vmatpush.msra.mxu2 %v1159_v49  ;;  %v181_v49 = vrot.slane %v105_v50, 4 }
  0xa9   :  { %v123_v52 = vpop.f32.mrf.mxu0 }
  0xaa   :  { %v166_v53 = vadd.f32 %v123_v52, %v105_v50  ;;  %v191_v50 = vld [vmem:[#allocation3 + $0x6] sm:$0x3f] }
  0xab   :  { %v143_v54 = vpop.f32.mrf.mxu1 }
  0xac   :  { %v167_v55 = vmul.f32 0.5, %v166_v53  ;;  %v174_v56 = vadd.f32 %v172_v51, %v143_v54 }
  0xae   :  { %831 = vtanh.f32 %v167_v55  ;;  %v175_v57 = vmul.f32 0.5, %v174_v56 }
  0xb0   :  { %833 = vtanh.f32 %v175_v57  ;;  %v163_v59 = vpop.f32.mrf.mxu2 }
  0xb1   :  { %v179_v62 = vadd.f32 %v1285_v58, %v163_v59  ;;  %v258_v59 = vrot.slane %v191_v50, 2 }
  0xb4   :  { %v832_v60 = vpop.eup %831 }
  0xb5   :  { %v169_v61 = vadd.f32 1.0, %v832_v60 }
  0xb6   :  { %v834_v63 = vpop.eup %833 }
  0xb7   :  { %v170_v0 = vmul.f32 0.5, %v169_v61  ;;  %v177_v52 = vadd.f32 1.0, %v834_v63 }
  0xb9   :  { %v180_v45 = vmul.f32 %v179_v62, %v170_v0  ;;  %v178_v51 = vmul.f32 0.5, %v177_v52 }
  0xbb   :  { %v183_v53 = vadd.f32 %v181_v49, %v180_v45  ;;  %v185_v54 = vsub.f32 1.0, %v178_v51  ;;  %v187_v56 = vmul.f32 %v178_v51, %v1153_v47  ;;  %v1545_v45 = vld [vmem:[#allocation16_spill] sm:$0xff]  ;;  %v1546_v47 = vld [vmem:[#allocation14_spill] sm:$0xff]  ;;  %v1547_v49 = vld [vmem:[#allocation17_spill] sm:$0xff] }
  0xbd   :  { %835 = vtanh.f32 %v183_v53 }
  0xc3   :  { %v836_v55 = vpop.eup %835 }
  0xc4   :  { %v186_v57 = vmul.f32 %v836_v55, %v185_v54 }
  0xc6   :  { %v1289_v48 = vadd.f32 %v187_v56, %v186_v57  ;;  %v267_v56 = vrot.slane %v191_v50, 4 }
  0xc8   :  { %189 = vst [vmem:[#allocation8] sm:$0x3] %v1289_v48  ;;  %208 = vmatmul.f32.vlgmr.msra.gmra.mxu3 %v1289_v48  ;;  %228 = vmatmul.f32.vlgmr.msrb.gmra.mxu0 %v1289_v48 }
  0xc9   :  { %248 = vmatmul.f32.vlgmr.msrb.gmra.mxu1 %v1289_v48  ;;  %406 = vmatpush.msra.mxu3 %v1010_v3 }
  0xca   :  { %453 = vmatpush.msrb.mxu0 %v1005_v1  ;;  %473 = vmatpush.msrb.mxu1 %v1016_v5 }
  0xcb   :  { %407 = vmatpush.msra.mxu3 %v1018_v6 }
  0xcc   :  { %454 = vmatpush.msrb.mxu0 %v1007_v2  ;;  %474 = vmatpush.msrb.mxu1 %v1022_v7 }
  0xcd   :  { %408 = vmatpush.msra.mxu3 %v1024_v8 }
  0xce   :  { %455 = vmatpush.msrb.mxu0 %v1013_v4  ;;  %475 = vmatpush.msrb.mxu1 %v1029_v10 }
  0xcf   :  { %409 = vmatpush.msra.mxu3 %v1034_v11 }
  0xd0   :  { %456 = vmatpush.msrb.mxu0 %v1026_v9  ;;  %476 = vmatpush.msrb.mxu1 %v1039_v13 }
  0xd1   :  { %410 = vmatpush.msra.mxu3 %v1044_v14 }
  0xd2   :  { %457 = vmatpush.msrb.mxu0 %v1036_v12  ;;  %477 = vmatpush.msrb.mxu1 %v1049_v16 }
  0xd3   :  { %411 = vmatpush.msra.mxu3 %v1054_v17 }
  0xd4   :  { %458 = vmatpush.msrb.mxu0 %v1046_v15  ;;  %478 = vmatpush.msrb.mxu1 %v1059_v19 }
  0xd5   :  { %412 = vmatpush.msra.mxu3 %v1064_v20 }
  0xd6   :  { %459 = vmatpush.msrb.mxu0 %v1056_v18  ;;  %479 = vmatpush.msrb.mxu1 %v1069_v22 }
  0xd7   :  { %413 = vmatpush.msra.mxu3 %v1074_v23 }
  0xd8   :  { %460 = vmatpush.msrb.mxu0 %v1066_v21  ;;  %480 = vmatpush.msrb.mxu1 %v1079_v25 }
  0xd9   :  { %414 = vmatpush.msra.mxu3 %v1084_v26 }
  0xda   :  { %461 = vmatpush.msrb.mxu0 %v1076_v24  ;;  %481 = vmatpush.msrb.mxu1 %v1089_v28 }
  0xdb   :  { %415 = vmatpush.msra.mxu3 %v1094_v29 }
  0xdc   :  { %462 = vmatpush.msrb.mxu0 %v1086_v27  ;;  %482 = vmatpush.msrb.mxu1 %v1099_v31 }
  0xdd   :  { %416 = vmatpush.msra.mxu3 %v1104_v32 }
  0xde   :  { %463 = vmatpush.msrb.mxu0 %v1096_v30  ;;  %483 = vmatpush.msrb.mxu1 %v1109_v34 }
  0xdf   :  { %417 = vmatpush.msra.mxu3 %v1114_v35 }
  0xe0   :  { %464 = vmatpush.msrb.mxu0 %v1106_v33  ;;  %484 = vmatpush.msrb.mxu1 %v1119_v37 }
  0xe1   :  { %418 = vmatpush.msra.mxu3 %v1124_v38 }
  0xe2   :  { %465 = vmatpush.msrb.mxu0 %v1116_v36  ;;  %485 = vmatpush.msrb.mxu1 %v1129_v40 }
  0xe3   :  { %419 = vmatpush.msra.mxu3 %v1134_v41 }
  0xe4   :  { %466 = vmatpush.msrb.mxu0 %v1126_v39  ;;  %486 = vmatpush.msrb.mxu1 %v1139_v43 }
  0xe5   :  { %420 = vmatpush.msra.mxu3 %v1144_v44 }
  0xe6   :  { %467 = vmatpush.msrb.mxu0 %v1136_v42  ;;  %487 = vmatpush.msrb.mxu1 %v1149_v46 }
  0xe7   :  { %421 = vmatpush.msra.mxu3 %v1545_v45 }
  0xe8   :  { %468 = vmatpush.msrb.mxu0 %v1546_v47  ;;  %488 = vmatpush.msrb.mxu1 %v1547_v49 }
 0x145   :  { %v229_v60 = vpop.f32.mrf.mxu0 }
 0x146   :  { %v260_v61 = vadd.f32 %v258_v59, %v229_v60  ;;  %v249_v51 = vpop.f32.mrf.mxu1 }
 0x147   :  { %v265_v57 = vadd.f32 %v1285_v58, %v249_v51 }
 0x148   :  { %v261_v52 = vmul.f32 0.5, %v260_v61 }
 0x14b   :  { %v209_v62 = vpop.f32.mrf.mxu3 }
 0x14c   :  { %v252_v63 = vadd.f32 %v209_v62, %v191_v50 }
 0x14e   :  { %v253_v0 = vmul.f32 0.5, %v252_v63 }
 0x150   :  { %837 = vtanh.f32 %v253_v0 }
 0x151   :  { %839 = vtanh.f32 %v261_v52 }
 0x156   :  { %v838_v53 = vpop.eup %837 }
 0x157   :  { %v255_v54 = vadd.f32 1.0, %v838_v53  ;;  %v840_v55 = vpop.eup %839 }
 0x158   :  { %v263_v49 = vadd.f32 1.0, %v840_v55 }
 0x159   :  { %v256_v47 = vmul.f32 0.5, %v255_v54 }
 0x15a   :  { %v264_v42 = vmul.f32 0.5, %v263_v49  ;;  %v278_v49 = vld [vmem:[#allocation3 + $0xc] sm:$0x3f] }
 0x15b   :  { %v266_v45 = vmul.f32 %v265_v57, %v256_v47  ;;  %v1552_v47 = vld [vmem:[#allocation17_spill] sm:$0xff]  ;;  %v345_v50 = vrot.slane %v278_v49, 2 }
 0x15c   :  { %v271_v59 = vsub.f32 1.0, %v264_v42  ;;  %v273_v62 = vmul.f32 %v264_v42, %v1289_v48  ;;  %v1548_v42 = vld [vmem:[#allocation12_spill] sm:$0xff] }
 0x15d   :  { %v269_v46 = vadd.f32 %v267_v56, %v266_v45  ;;  %v1550_v48 = vld [vmem:[#allocation16_spill] sm:$0xff]  ;;  %v1551_v45 = vld [vmem:[#allocation14_spill] sm:$0xff] }
 0x15f   :  { %841 = vtanh.f32 %v269_v46  ;;  %v1549_v46 = vld [vmem:[#allocation15_spill] sm:$0xff] }
 0x165   :  { %v842_v60 = vpop.eup %841 }
 0x166   :  { %v272_v61 = vmul.f32 %v842_v60, %v271_v59 }
 0x168   :  { %v1345_v63 = vadd.f32 %v273_v62, %v272_v61 }
 0x16a   :  { %276 = vst [vmem:[#allocation8 + $0x2] sm:$0x3] %v1345_v63  ;;  %295 = vmatmul.f32.vlgmr.msrb.gmra.mxu2 %v1345_v63  ;;  %315 = vmatmul.f32.vlgmr.msrb.gmra.mxu3 %v1345_v63 }
 0x16b   :  { %335 = vmatmul.f32.vlgmr.msra.gmra.mxu0 %v1345_v63  ;;  %493 = vmatpush.msrb.mxu2 %v1010_v3 }
 0x16c   :  { %540 = vmatpush.msrb.mxu3 %v1005_v1  ;;  %560 = vmatpush.msra.mxu0 %v1016_v5 }
 0x16d   :  { %494 = vmatpush.msrb.mxu2 %v1018_v6 }
 0x16e   :  { %541 = vmatpush.msrb.mxu3 %v1007_v2  ;;  %561 = vmatpush.msra.mxu0 %v1022_v7 }
 0x16f   :  { %495 = vmatpush.msrb.mxu2 %v1024_v8 }
 0x170   :  { %542 = vmatpush.msrb.mxu3 %v1013_v4  ;;  %562 = vmatpush.msra.mxu0 %v1029_v10 }
 0x171   :  { %496 = vmatpush.msrb.mxu2 %v1034_v11 }
 0x172   :  { %543 = vmatpush.msrb.mxu3 %v1026_v9  ;;  %563 = vmatpush.msra.mxu0 %v1039_v13 }
 0x173   :  { %497 = vmatpush.msrb.mxu2 %v1044_v14 }
 0x174   :  { %544 = vmatpush.msrb.mxu3 %v1036_v12  ;;  %564 = vmatpush.msra.mxu0 %v1049_v16 }
 0x175   :  { %498 = vmatpush.msrb.mxu2 %v1054_v17 }
 0x176   :  { %545 = vmatpush.msrb.mxu3 %v1046_v15  ;;  %565 = vmatpush.msra.mxu0 %v1059_v19 }
 0x177   :  { %499 = vmatpush.msrb.mxu2 %v1064_v20 }
 0x178   :  { %546 = vmatpush.msrb.mxu3 %v1056_v18  ;;  %566 = vmatpush.msra.mxu0 %v1069_v22 }
 0x179   :  { %500 = vmatpush.msrb.mxu2 %v1074_v23 }
 0x17a   :  { %547 = vmatpush.msrb.mxu3 %v1066_v21  ;;  %567 = vmatpush.msra.mxu0 %v1079_v25 }
 0x17b   :  { %501 = vmatpush.msrb.mxu2 %v1084_v26 }
 0x17c   :  { %548 = vmatpush.msrb.mxu3 %v1076_v24  ;;  %568 = vmatpush.msra.mxu0 %v1089_v28 }
 0x17d   :  { %502 = vmatpush.msrb.mxu2 %v1094_v29 }
 0x17e   :  { %549 = vmatpush.msrb.mxu3 %v1086_v27  ;;  %569 = vmatpush.msra.mxu0 %v1099_v31 }
 0x17f   :  { %503 = vmatpush.msrb.mxu2 %v1104_v32 }
 0x180   :  { %550 = vmatpush.msrb.mxu3 %v1096_v30  ;;  %570 = vmatpush.msra.mxu0 %v1109_v34 }
 0x181   :  { %504 = vmatpush.msrb.mxu2 %v1114_v35 }
 0x182   :  { %551 = vmatpush.msrb.mxu3 %v1106_v33  ;;  %571 = vmatpush.msra.mxu0 %v1119_v37 }
 0x183   :  { %505 = vmatpush.msrb.mxu2 %v1124_v38 }
 0x184   :  { %552 = vmatpush.msrb.mxu3 %v1116_v36  ;;  %572 = vmatpush.msra.mxu0 %v1129_v40 }
 0x185   :  { %506 = vmatpush.msrb.mxu2 %v1134_v41 }
 0x186   :  { %553 = vmatpush.msrb.mxu3 %v1126_v39  ;;  %573 = vmatpush.msra.mxu0 %v1139_v43 }
 0x187   :  { %507 = vmatpush.msrb.mxu2 %v1144_v44 }
 0x188   :  { %554 = vmatpush.msrb.mxu3 %v1548_v42  ;;  %574 = vmatpush.msra.mxu0 %v1549_v46 }
 0x189   :  { %508 = vmatpush.msrb.mxu2 %v1550_v48 }
 0x18a   :  { %555 = vmatpush.msrb.mxu3 %v1551_v45  ;;  %575 = vmatpush.msra.mxu0 %v1552_v47  ;;  %v354_v45 = vrot.slane %v278_v49, 4 }
 0x1e8   :  { %v336_v57 = vpop.f32.mrf.mxu0 }
 0x1e9   :  { %v352_v62 = vadd.f32 %v1285_v58, %v336_v57 }
 0x1ed   :  { %v296_v0 = vpop.f32.mrf.mxu2  ;;  %v316_v52 = vpop.f32.mrf.mxu3 }
 0x1ee   :  { %v339_v53 = vadd.f32 %v296_v0, %v278_v49  ;;  %v347_v51 = vadd.f32 %v345_v50, %v316_v52 }
 0x1f0   :  { %v340_v54 = vmul.f32 0.5, %v339_v53  ;;  %v348_v55 = vmul.f32 0.5, %v347_v51 }
 0x1f2   :  { %843 = vtanh.f32 %v340_v54 }
 0x1f3   :  { %845 = vtanh.f32 %v348_v55 }
 0x1f8   :  { %v844_v56 = vpop.eup %843 }
 0x1f9   :  { %v342_v59 = vadd.f32 1.0, %v844_v56  ;;  %v846_v60 = vpop.eup %845 }
 0x1fa   :  { %v350_v47 = vadd.f32 1.0, %v846_v60 }
 0x1fb   :  { %v343_v61 = vmul.f32 0.5, %v342_v59 }
 0x1fc   :  { %v351_v42 = vmul.f32 0.5, %v350_v47  ;;  %v365_v47 = vld [vmem:[#allocation3 + $0x12] sm:$0x3f] }
 0x1fd   :  { %v353_v48 = vmul.f32 %v352_v62, %v343_v61  ;;  %v432_v55 = vrot.slane %v365_v47, 2 }
 0x1fe   :  { %v358_v44 = vsub.f32 1.0, %v351_v42  ;;  %v360_v52 = vmul.f32 %v351_v42, %v1345_v63  ;;  %v1554_v63 = vld [vmem:[#allocation12_spill] sm:$0xff]  ;;  %v1555_v42 = vld [vmem:[#allocation15_spill] sm:$0xff] }
 0x1ff   :  { %v356_v46 = vadd.f32 %v354_v45, %v353_v48  ;;  %v1557_v48 = vld [vmem:[#allocation14_spill] sm:$0xff]  ;;  %v1558_v45 = vld [vmem:[#allocation17_spill] sm:$0xff] }
 0x201   :  { %847 = vtanh.f32 %v356_v46  ;;  %v1556_v46 = vld [vmem:[#allocation16_spill] sm:$0xff] }
 0x207   :  { %v848_v0 = vpop.eup %847 }
 0x208   :  { %v359_v50 = vmul.f32 %v848_v0, %v358_v44  ;;  %v1553_v44 = vld [vmem:[#allocation13_spill] sm:$0xff] }
 0x20a   :  { %v1401_v53 = vadd.f32 %v360_v52, %v359_v50  ;;  %v441_v50 = vrot.slane %v365_v47, 4 }
 0x20c   :  { %363 = vst [vmem:[#allocation8 + $0x4] sm:$0x3] %v1401_v53  ;;  %382 = vmatmul.f32.vlgmr.msra.gmra.mxu1 %v1401_v53  ;;  %402 = vmatmul.f32.vlgmr.msra.gmra.mxu2 %v1401_v53 }
 0x20d   :  { %422 = vmatmul.f32.vlgmr.msra.gmra.mxu3 %v1401_v53  ;;  %580 = vmatpush.msra.mxu1 %v1010_v3 }
 0x20e   :  { %627 = vmatpush.msra.mxu2 %v1005_v1  ;;  %647 = vmatpush.msra.mxu3 %v1016_v5 }
 0x20f   :  { %581 = vmatpush.msra.mxu1 %v1018_v6 }
 0x210   :  { %628 = vmatpush.msra.mxu2 %v1007_v2  ;;  %648 = vmatpush.msra.mxu3 %v1022_v7 }
 0x211   :  { %582 = vmatpush.msra.mxu1 %v1024_v8 }
 0x212   :  { %629 = vmatpush.msra.mxu2 %v1013_v4  ;;  %649 = vmatpush.msra.mxu3 %v1029_v10 }
 0x213   :  { %583 = vmatpush.msra.mxu1 %v1034_v11 }
 0x214   :  { %630 = vmatpush.msra.mxu2 %v1026_v9  ;;  %650 = vmatpush.msra.mxu3 %v1039_v13 }
 0x215   :  { %584 = vmatpush.msra.mxu1 %v1044_v14 }
 0x216   :  { %631 = vmatpush.msra.mxu2 %v1036_v12  ;;  %651 = vmatpush.msra.mxu3 %v1049_v16 }
 0x217   :  { %585 = vmatpush.msra.mxu1 %v1054_v17 }
 0x218   :  { %632 = vmatpush.msra.mxu2 %v1046_v15  ;;  %652 = vmatpush.msra.mxu3 %v1059_v19 }
 0x219   :  { %586 = vmatpush.msra.mxu1 %v1064_v20 }
 0x21a   :  { %633 = vmatpush.msra.mxu2 %v1056_v18  ;;  %653 = vmatpush.msra.mxu3 %v1069_v22 }
 0x21b   :  { %587 = vmatpush.msra.mxu1 %v1074_v23 }
 0x21c   :  { %634 = vmatpush.msra.mxu2 %v1066_v21  ;;  %654 = vmatpush.msra.mxu3 %v1079_v25 }
 0x21d   :  { %588 = vmatpush.msra.mxu1 %v1084_v26 }
 0x21e   :  { %635 = vmatpush.msra.mxu2 %v1076_v24  ;;  %655 = vmatpush.msra.mxu3 %v1089_v28 }
 0x21f   :  { %589 = vmatpush.msra.mxu1 %v1094_v29 }
 0x220   :  { %636 = vmatpush.msra.mxu2 %v1086_v27  ;;  %656 = vmatpush.msra.mxu3 %v1099_v31 }
 0x221   :  { %590 = vmatpush.msra.mxu1 %v1104_v32 }
 0x222   :  { %637 = vmatpush.msra.mxu2 %v1096_v30  ;;  %657 = vmatpush.msra.mxu3 %v1109_v34 }
 0x223   :  { %591 = vmatpush.msra.mxu1 %v1114_v35 }
 0x224   :  { %638 = vmatpush.msra.mxu2 %v1106_v33  ;;  %658 = vmatpush.msra.mxu3 %v1119_v37 }
 0x225   :  { %592 = vmatpush.msra.mxu1 %v1124_v38 }
 0x226   :  { %639 = vmatpush.msra.mxu2 %v1116_v36  ;;  %659 = vmatpush.msra.mxu3 %v1129_v40 }
 0x227   :  { %593 = vmatpush.msra.mxu1 %v1134_v41 }
 0x228   :  { %640 = vmatpush.msra.mxu2 %v1126_v39  ;;  %660 = vmatpush.msra.mxu3 %v1139_v43 }
 0x229   :  { %594 = vmatpush.msra.mxu1 %v1553_v44 }
 0x22a   :  { %641 = vmatpush.msra.mxu2 %v1554_v63  ;;  %661 = vmatpush.msra.mxu3 %v1555_v42 }
 0x22b   :  { %595 = vmatpush.msra.mxu1 %v1556_v46 }
 0x22c   :  { %642 = vmatpush.msra.mxu2 %v1557_v48  ;;  %662 = vmatpush.msra.mxu3 %v1558_v45 }
 0x289   :  { %v383_v49 = vpop.f32.mrf.mxu1 }
 0x28a   :  { %v426_v51 = vadd.f32 %v383_v49, %v365_v47 }
 0x28c   :  { %v427_v54 = vmul.f32 0.5, %v426_v51 }
 0x28e   :  { %849 = vtanh.f32 %v427_v54 }
 0x28f   :  { %v403_v56 = vpop.f32.mrf.mxu2 }
 0x290   :  { %v434_v57 = vadd.f32 %v432_v55, %v403_v56  ;;  %v423_v62 = vpop.f32.mrf.mxu3 }
 0x291   :  { %v439_v52 = vadd.f32 %v1285_v58, %v423_v62 }
 0x292   :  { %v435_v59 = vmul.f32 0.5, %v434_v57 }
 0x294   :  { %v850_v60 = vpop.eup %849  ;;  %851 = vtanh.f32 %v435_v59 }
 0x295   :  { %v429_v61 = vadd.f32 1.0, %v850_v60 }
 0x297   :  { %v430_v0 = vmul.f32 0.5, %v429_v61 }
 0x299   :  { %v440_v48 = vmul.f32 %v439_v52, %v430_v0 }
 0x29a   :  { %v852_v46 = vpop.eup %851 }
 0x29b   :  { %v437_v45 = vadd.f32 1.0, %v852_v46  ;;  %v443_v42 = vadd.f32 %v441_v50, %v440_v48 }
 0x29d   :  { %853 = vtanh.f32 %v443_v42  ;;  %v438_v49 = vmul.f32 0.5, %v437_v45 }
 0x29f   :  { %v445_v51 = vsub.f32 1.0, %v438_v49  ;;  %v447_v54 = vmul.f32 %v438_v49, %v1401_v53  ;;  %v890_v53 = vld [vmem:[#allocation6 + $0x70] sm:$0xff] }
 0x2a3   :  { %v854_v63 = vpop.eup %853 }
 0x2a4   :  { %v446_v55 = vmul.f32 %v854_v63, %v445_v51  ;;  %v539_v63 = vld [vmem:[#allocation3 + $0x1e] sm:$0x3f] }
 0x2a5   :  { %v606_v42 = vrot.slane %v539_v63, 2  ;;  %v615_v0 = vrot.slane %v539_v63, 4 }
 0x2a6   :  { %v1457_v56 = vadd.f32 %v447_v54, %v446_v55 }
 0x2a8   :  { %450 = vst [vmem:[#allocation8 + $0x6] sm:$0x3] %v1457_v56  ;;  %469 = vmatmul.f32.vlgmr.msrb.gmra.mxu0 %v1457_v56  ;;  %489 = vmatmul.f32.vlgmr.msrb.gmra.mxu1 %v1457_v56 }
 0x2a9   :  { %509 = vmatmul.f32.vlgmr.msrb.gmra.mxu2 %v1457_v56  ;;  %667 = vmatpush.msrb.mxu0 %v1010_v3  ;;  %v1561_v3 = vld [vmem:[#allocation16_spill] sm:$0xff] }
 0x2aa   :  { %714 = vmatpush.msrb.mxu1 %v1005_v1  ;;  %734 = vmatpush.msrb.mxu2 %v1016_v5  ;;  %v1559_v1 = vld [vmem:[#allocation12_spill] sm:$0xff]  ;;  %v1563_v5 = vld [vmem:[#allocation17_spill] sm:$0xff] }
 0x2ab   :  { %668 = vmatpush.msrb.mxu0 %v1018_v6  ;;  %v452_v6 = vld [vmem:[#allocation3 + $0x18] sm:$0x3f] }
 0x2ac   :  { %715 = vmatpush.msrb.mxu1 %v1007_v2  ;;  %735 = vmatpush.msrb.mxu2 %v1022_v7  ;;  %v1560_v2 = vld [vmem:[#allocation15_spill] sm:$0xff]  ;;  %v519_v7 = vrot.slane %v452_v6, 2 }
 0x2ad   :  { %669 = vmatpush.msrb.mxu0 %v1024_v8 }
 0x2ae   :  { %716 = vmatpush.msrb.mxu1 %v1013_v4  ;;  %736 = vmatpush.msrb.mxu2 %v1029_v10  ;;  %v1562_v4 = vld [vmem:[#allocation14_spill] sm:$0xff] }
 0x2af   :  { %670 = vmatpush.msrb.mxu0 %v1034_v11 }
 0x2b0   :  { %717 = vmatpush.msrb.mxu1 %v1026_v9  ;;  %737 = vmatpush.msrb.mxu2 %v1039_v13 }
 0x2b1   :  { %671 = vmatpush.msrb.mxu0 %v1044_v14 }
 0x2b2   :  { %718 = vmatpush.msrb.mxu1 %v1036_v12  ;;  %738 = vmatpush.msrb.mxu2 %v1049_v16 }
 0x2b3   :  { %672 = vmatpush.msrb.mxu0 %v1054_v17 }
 0x2b4   :  { %719 = vmatpush.msrb.mxu1 %v1046_v15  ;;  %739 = vmatpush.msrb.mxu2 %v1059_v19  ;;  %v528_v19 = vrot.slane %v452_v6, 4 }
 0x2b5   :  { %673 = vmatpush.msrb.mxu0 %v1064_v20 }
 0x2b6   :  { %720 = vmatpush.msrb.mxu1 %v1056_v18  ;;  %740 = vmatpush.msrb.mxu2 %v1069_v22 }
 0x2b7   :  { %674 = vmatpush.msrb.mxu0 %v1074_v23 }
 0x2b8   :  { %721 = vmatpush.msrb.mxu1 %v1066_v21  ;;  %741 = vmatpush.msrb.mxu2 %v1079_v25 }
 0x2b9   :  { %675 = vmatpush.msrb.mxu0 %v1084_v26 }
 0x2ba   :  { %722 = vmatpush.msrb.mxu1 %v1076_v24  ;;  %742 = vmatpush.msrb.mxu2 %v1089_v28 }
 0x2bb   :  { %676 = vmatpush.msrb.mxu0 %v1094_v29 }
 0x2bc   :  { %723 = vmatpush.msrb.mxu1 %v1086_v27  ;;  %743 = vmatpush.msrb.mxu2 %v1099_v31  ;;  %v880_v31 = vld [vmem:[#allocation6 + $0x160] sm:$0xff] }
 0x2bd   :  { %677 = vmatpush.msrb.mxu0 %v1104_v32  ;;  %v881_v32 = vld [vmem:[#allocation6 + $0x148] sm:$0xff] }
 0x2be   :  { %724 = vmatpush.msrb.mxu1 %v1096_v30  ;;  %744 = vmatpush.msrb.mxu2 %v1109_v34  ;;  %v879_v30 = vld [vmem:[#allocation6 + $0x178] sm:$0xff] }
 0x2bf   :  { %678 = vmatpush.msrb.mxu0 %v1114_v35  ;;  %v883_v34 = vld [vmem:[#allocation6 + $0x118] sm:$0xff]  ;;  %v884_v35 = vld [vmem:[#allocation6 + $0x100] sm:$0xff] }
 0x2c0   :  { %725 = vmatpush.msrb.mxu1 %v1106_v33  ;;  %745 = vmatpush.msrb.mxu2 %v1119_v37  ;;  %v882_v33 = vld [vmem:[#allocation6 + $0x130] sm:$0xff] }
 0x2c1   :  { %679 = vmatpush.msrb.mxu0 %v1124_v38  ;;  %v886_v37 = vld [vmem:[#allocation6 + $0xd0] sm:$0xff] }
 0x2c2   :  { %726 = vmatpush.msrb.mxu1 %v1116_v36  ;;  %746 = vmatpush.msrb.mxu2 %v1129_v40  ;;  %v885_v36 = vld [vmem:[#allocation6 + $0xe8] sm:$0xff]  ;;  %v888_v40 = vld [vmem:[#allocation6 + $0xa0] sm:$0xff] }
 0x2c3   :  { %680 = vmatpush.msrb.mxu0 %v1134_v41 }
 0x2c4   :  { %727 = vmatpush.msrb.mxu1 %v1126_v39  ;;  %747 = vmatpush.msrb.mxu2 %v1139_v43  ;;  %v887_v39 = vld [vmem:[#allocation6 + $0xb8] sm:$0xff]  ;;  %v889_v43 = vld [vmem:[#allocation6 + $0x88] sm:$0xff] }
 0x2c5   :  { %681 = vmatpush.msrb.mxu0 %v1553_v44 }
 0x2c6   :  { %728 = vmatpush.msrb.mxu1 %v1559_v1  ;;  %748 = vmatpush.msrb.mxu2 %v1560_v2 }
 0x2c7   :  { %682 = vmatpush.msrb.mxu0 %v1561_v3 }
 0x2c8   :  { %729 = vmatpush.msrb.mxu1 %v1562_v4  ;;  %749 = vmatpush.msrb.mxu2 %v1563_v5 }
 0x325   :  { %v470_v8 = vpop.f32.mrf.mxu0  ;;  %v490_v9 = vpop.f32.mrf.mxu1 }
 0x326   :  { %v513_v10 = vadd.f32 %v470_v8, %v452_v6  ;;  %v521_v11 = vadd.f32 %v519_v7, %v490_v9 }
 0x328   :  { %v514_v12 = vmul.f32 0.5, %v513_v10  ;;  %v522_v13 = vmul.f32 0.5, %v521_v11 }
 0x32a   :  { %855 = vtanh.f32 %v514_v12 }
 0x32b   :  { %857 = vtanh.f32 %v522_v13 }
 0x32c   :  { %v510_v15 = vpop.f32.mrf.mxu2 }
 0x32d   :  { %v526_v20 = vadd.f32 %v1285_v58, %v510_v15 }
 0x330   :  { %v856_v14 = vpop.eup %855 }
 0x331   :  { %v516_v16 = vadd.f32 1.0, %v856_v14  ;;  %v858_v17 = vpop.eup %857 }
 0x332   :  { %v524_v22 = vadd.f32 1.0, %v858_v17 }
 0x333   :  { %v517_v18 = vmul.f32 0.5, %v516_v16 }
 0x334   :  { %v525_v24 = vmul.f32 0.5, %v524_v22 }
 0x335   :  { %v527_v21 = vmul.f32 %v526_v20, %v517_v18 }
 0x336   :  { %v532_v25 = vsub.f32 1.0, %v525_v24  ;;  %v534_v27 = vmul.f32 %v525_v24, %v1457_v56 }
 0x337   :  { %v530_v23 = vadd.f32 %v528_v19, %v527_v21 }
 0x339   :  { %859 = vtanh.f32 %v530_v23 }
 0x33f   :  { %v860_v26 = vpop.eup %859 }
 0x340   :  { %v533_v28 = vmul.f32 %v860_v26, %v532_v25 }
 0x342   :  { %v535_v29 = vadd.f32 %v534_v27, %v533_v28  ;;  %v713_v27 = vld [vmem:[#allocation3 + $0x2a] sm:$0x3f] }
 0x344   :  { %537 = vst [vmem:[#allocation8 + $0x8] sm:$0x3] %v535_v29  ;;  %556 = vmatmul.f32.vlgmr.msrb.gmra.mxu3 %v535_v29  ;;  %576 = vmatmul.f32.vlgmr.msra.gmra.mxu0 %v535_v29 }
 0x345   :  { %596 = vmatmul.f32.vlgmr.msra.gmra.mxu1 %v535_v29  ;;  %754 = vmatpush.msrb.mxu3 %v879_v30 }
 0x347   :  { %755 = vmatpush.msrb.mxu3 %v880_v31  ;;  %v780_v31 = vrot.slane %v713_v27, 2 }
 0x349   :  { %756 = vmatpush.msrb.mxu3 %v881_v32 }
 0x34b   :  { %757 = vmatpush.msrb.mxu3 %v882_v33 }
 0x34d   :  { %758 = vmatpush.msrb.mxu3 %v883_v34 }
 0x34f   :  { %759 = vmatpush.msrb.mxu3 %v884_v35 }
 0x351   :  { %760 = vmatpush.msrb.mxu3 %v885_v36 }
 0x353   :  { %761 = vmatpush.msrb.mxu3 %v886_v37 }
 0x355   :  { %762 = vmatpush.msrb.mxu3 %v887_v39 }
 0x357   :  { %763 = vmatpush.msrb.mxu3 %v888_v40  ;;  %v789_v40 = vrot.slane %v713_v27, 4 }
 0x359   :  { %764 = vmatpush.msrb.mxu3 %v889_v43 }
 0x35b   :  { %765 = vmatpush.msrb.mxu3 %v890_v53 }
 0x35d   :  { %766 = vmatpush.msrb.mxu3 %v1124_v38 }
 0x35f   :  { %767 = vmatpush.msrb.mxu3 %v1134_v41 }
 0x361   :  { %768 = vmatpush.msrb.mxu3 %v1553_v44 }
 0x363   :  { %769 = vmatpush.msrb.mxu3 %v1561_v3  ;;  %v626_v3 = vld [vmem:[#allocation3 + $0x24] sm:$0x3f] }
 0x364   :  { %v693_v4 = vrot.slane %v626_v3, 2  ;;  %v702_v17 = vrot.slane %v626_v3, 4 }
 0x3c1   :  { %v577_v46 = vpop.f32.mrf.mxu0 }
 0x3c2   :  { %v608_v48 = vadd.f32 %v606_v42, %v577_v46  ;;  %v597_v62 = vpop.f32.mrf.mxu1 }
 0x3c3   :  { %v613_v41 = vadd.f32 %v1285_v58, %v597_v62 }
 0x3c4   :  { %v609_v59 = vmul.f32 0.5, %v608_v48 }
 0x3c7   :  { %v557_v45 = vpop.f32.mrf.mxu3 }
 0x3c8   :  { %v600_v47 = vadd.f32 %v557_v45, %v539_v63 }
 0x3ca   :  { %v601_v57 = vmul.f32 0.5, %v600_v47 }
 0x3cc   :  { %861 = vtanh.f32 %v601_v57 }
 0x3cd   :  { %863 = vtanh.f32 %v609_v59 }
 0x3d2   :  { %v862_v60 = vpop.eup %861 }
 0x3d3   :  { %v603_v61 = vadd.f32 1.0, %v862_v60  ;;  %v864_v38 = vpop.eup %863 }
 0x3d4   :  { %v611_v52 = vadd.f32 1.0, %v864_v38 }
 0x3d5   :  { %v604_v44 = vmul.f32 0.5, %v603_v61 }
 0x3d6   :  { %v612_v51 = vmul.f32 0.5, %v611_v52 }
 0x3d7   :  { %v614_v50 = vmul.f32 %v613_v41, %v604_v44 }
 0x3d8   :  { %v619_v54 = vsub.f32 1.0, %v612_v51  ;;  %v621_v56 = vmul.f32 %v612_v51, %v535_v29 }
 0x3d9   :  { %v617_v49 = vadd.f32 %v615_v0, %v614_v50 }
 0x3db   :  { %865 = vtanh.f32 %v617_v49 }
 0x3e1   :  { %v866_v55 = vpop.eup %865 }
 0x3e2   :  { %v620_v1 = vmul.f32 %v866_v55, %v619_v54 }
 0x3e4   :  { %v622_v2 = vadd.f32 %v621_v56, %v620_v1 }
 0x3e6   :  { %624 = vst [vmem:[#allocation8 + $0xa] sm:$0x3] %v622_v2  ;;  %643 = vmatmul.f32.vlgmr.msra.gmra.mxu2 %v622_v2  ;;  %663 = vmatmul.f32.vlgmr.msra.gmra.mxu3 %v622_v2 }
 0x3e7   :  { %683 = vmatmul.f32.vlgmr.msrb.gmra.mxu0 %v622_v2 }
 0x464   :  { %v684_v12 = vpop.f32.mrf.mxu0 }
 0x465   :  { %v700_v15 = vadd.f32 %v1285_v58, %v684_v12 }
 0x469   :  { %v644_v5 = vpop.f32.mrf.mxu2  ;;  %v664_v6 = vpop.f32.mrf.mxu3 }
 0x46a   :  { %v687_v7 = vadd.f32 %v644_v5, %v626_v3  ;;  %v695_v8 = vadd.f32 %v693_v4, %v664_v6 }
 0x46c   :  { %v688_v9 = vmul.f32 0.5, %v687_v7  ;;  %v696_v10 = vmul.f32 0.5, %v695_v8 }
 0x46e   :  { %867 = vtanh.f32 %v688_v9 }
 0x46f   :  { %869 = vtanh.f32 %v696_v10 }
 0x474   :  { %v868_v11 = vpop.eup %867 }
 0x475   :  { %v690_v13 = vadd.f32 1.0, %v868_v11  ;;  %v870_v14 = vpop.eup %869 }
 0x476   :  { %v698_v19 = vadd.f32 1.0, %v870_v14 }
 0x477   :  { %v691_v16 = vmul.f32 0.5, %v690_v13 }
 0x478   :  { %v699_v21 = vmul.f32 0.5, %v698_v19 }
 0x479   :  { %v701_v18 = vmul.f32 %v700_v15, %v691_v16 }
 0x47a   :  { %v706_v22 = vsub.f32 1.0, %v699_v21  ;;  %v708_v25 = vmul.f32 %v699_v21, %v622_v2 }
 0x47b   :  { %v704_v20 = vadd.f32 %v702_v17, %v701_v18 }
 0x47d   :  { %871 = vtanh.f32 %v704_v20 }
 0x483   :  { %v872_v23 = vpop.eup %871 }
 0x484   :  { %v707_v24 = vmul.f32 %v872_v23, %v706_v22 }
 0x486   :  { %v709_v26 = vadd.f32 %v708_v25, %v707_v24 }
 0x488   :  { %711 = vst [vmem:[#allocation8 + $0xc] sm:$0x3] %v709_v26  ;;  %730 = vmatmul.f32.vlgmr.msrb.gmra.mxu1 %v709_v26  ;;  %750 = vmatmul.f32.vlgmr.msrb.gmra.mxu2 %v709_v26 }
 0x489   :  { %770 = vmatmul.f32.vlgmr.msrb.gmra.mxu3 %v709_v26 }
 0x505   :  { %v731_v28 = vpop.f32.mrf.mxu1 }
 0x506   :  { %v774_v29 = vadd.f32 %v731_v28, %v713_v27 }
 0x508   :  { %v775_v30 = vmul.f32 0.5, %v774_v29 }
 0x50a   :  { %873 = vtanh.f32 %v775_v30 }
 0x50b   :  { %v751_v32 = vpop.f32.mrf.mxu2 }
 0x50c   :  { %v782_v33 = vadd.f32 %v780_v31, %v751_v32  ;;  %v771_v36 = vpop.f32.mrf.mxu3 }
 0x50d   :  { %v787_v43 = vadd.f32 %v1285_v58, %v771_v36 }
 0x50e   :  { %v783_v34 = vmul.f32 0.5, %v782_v33 }
 0x510   :  { %v874_v35 = vpop.eup %873  ;;  %875 = vtanh.f32 %v783_v34 }
 0x511   :  { %v777_v37 = vadd.f32 1.0, %v874_v35 }
 0x513   :  { %v778_v39 = vmul.f32 0.5, %v777_v37 }
 0x515   :  { %v788_v53 = vmul.f32 %v787_v43, %v778_v39 }
 0x516   :  { %v876_v63 = vpop.eup %875 }
 0x517   :  { %v785_v42 = vadd.f32 1.0, %v876_v63  ;;  %v791_v46 = vadd.f32 %v789_v40, %v788_v53 }
 0x519   :  { %877 = vtanh.f32 %v791_v46  ;;  %v786_v48 = vmul.f32 0.5, %v785_v42 }
 0x51b   :  { %v793_v45 = vsub.f32 1.0, %v786_v48  ;;  %v795_v57 = vmul.f32 %v786_v48, %v709_v26 }
 0x51f   :  { %v878_v47 = vpop.eup %877 }
 0x520   :  { %v794_v59 = vmul.f32 %v878_v47, %v793_v45 }
 0x522   :  { %v796_v60 = vadd.f32 %v795_v57, %v794_v59 }
 0x524   :  { %798 = vst [vmem:[#allocation8 + $0xe] sm:$0x3] %v796_v60 }
 0x525   :  { %799 = vst [vmem:[#allocation2] sm:$0x3] %v796_v60  ;;  %812 = dma.vmem_to_hbm [thread:$0]  %s805_s26, 256, %s807_s29, [#allocation5], %s977_s30, %s977_s30, %s978_s4  }
 0x526   :  { %967 = dma.done.wait [#allocation5], 256  }
 0x527   :  { %968 = vsyncadd [#allocation5], 4294967040 }
 0x528   :  { %817 = vsyncpa [#allocation4], 1 }
 0x529   :  { %818 = vsyncpa [#allocation7], 1 }
 0x52a   :  { %819 = vsyncpa [#allocation5], 1 }

</bundles_post_ra>
